<compile_context>
chip_gen: v6e
topology: v6e:2x2x1
jax: 0.10.0
libtpu: 0.0.40
codegen_flags: <defaults>
</compile_context>

<pallas_src>
import functools

import jax
import jax.numpy as jnp
from jax import lax
from jax.experimental import pallas as pl
from jax.experimental.pallas import tpu as pltpu

# MXU operands are cast to bf16 (f32 accumulation, f32 gates/cell state).
# Set to jnp.float32 for bit-exact f32 matmuls.
_MATMUL_DTYPE = jnp.bfloat16
_TIME_UNROLL = 8          # bounded unroll of the recurrence loop


def _lstm_stack_kernel(*refs, hidden_size, seq_len, batch, num_dirs,
                       num_layers, unroll):
    """Whole LSTM stack (all layers, all directions, all timesteps).

    refs = (x_ref, [w_ih_cat, w_hh_stack, b_cat] * num_layers,   # inputs
            out_ref, hlast_ref, clast_ref,                       # outputs
            xp_sc, act_sc)                                       # VMEM scratch

    Kernel-view shapes (time-major flat rows, row r = t*Bp + b, Bp = padded B):
      x_ref      : (T*Bp, I)            bf16
      w_ih_cat   : (in_feat, D*4H)      bf16   gate order [i|f|o|g] per dir
      w_hh_stack : (D, H, 4H)           bf16
      b_cat      : (1, D*4H)            f32    (b_ih + b_hh, reordered)
      out_ref    : (T*Bp, D*H)          f32
      hlast_ref, clast_ref : (L*D, Bp, H) f32
      xp_sc      : (T*Bp, D*4H)         f32    hoisted input projection
      act_sc     : (T*Bp, D*H)          f32    inter-layer activation slab
    """
    H, T, Bp, D, L = hidden_size, seq_len, batch, num_dirs, num_layers
    G = 4 * H

    x_ref = refs[0]
    w_refs = refs[1:1 + 3 * L]
    out_ref, hlast_ref, clast_ref, xp_sc, act_sc = refs[1 + 3 * L:]

    def cell(gates, c_prev):
        # gates: (Bp, 4H) f32, gate layout [i | f | o | g] (reordered at prep).
        sig = jax.nn.sigmoid(gates[:, :3 * H])      # one wide EUP pass
        i_g = sig[:, 0:H]
        f_g = sig[:, H:2 * H]
        o_g = sig[:, 2 * H:3 * H]
        g_g = jnp.tanh(gates[:, 3 * H:])            # one wide EUP pass
        c_new = f_g * c_prev + i_g * g_g
        h_new = o_g * jnp.tanh(c_new)
        return h_new, c_new

    for layer in range(L):                          # static Python loop
        w_ih_ref, w_hh_ref, b_ref = w_refs[3 * layer:3 * layer + 3]

        if layer == 0:
            x_in = x_ref[...]                                        # bf16
        else:
            # Previous layer's output slab, resident in VMEM (no HBM trip).
            x_in = act_sc[...].astype(_MATMUL_DTYPE)

        # Hoisted input projection for ALL timesteps and BOTH directions:
        # one well-shaped (T*Bp, in_feat) @ (in_feat, D*4H) MXU pass.
        xp_sc[...] = (jnp.dot(x_in, w_ih_ref[...],
                              preferred_element_type=jnp.float32)
                      + b_ref[...])

        # Hoist the recurrent weights out of the time loop.
        w_hh = [w_hh_ref[d] for d in range(D)]      # each (H, 4H) bf16

        if D == 1:
            def step(t, carry):
                h, c = carry
                row = pl.multiple_of(t * Bp, Bp)
                gates = (xp_sc[pl.ds(row, Bp), :]
                         + jnp.dot(h.astype(_MATMUL_DTYPE), w_hh[0],
                                   preferred_element_type=jnp.float32))
                h_new, c_new = cell(gates, c)
                act_sc[pl.ds(row, Bp), :] = h_new
                return h_new, c_new

            init = (jnp.zeros((Bp, H), jnp.float32),
                    jnp.zeros((Bp, H), jnp.float32))
            h_l, c_l = lax.fori_loop(0, T, step, init, unroll=unroll)
            hlast_ref[layer] = h_l.astype(hlast_ref.dtype)
            clast_ref[layer] = c_l.astype(clast_ref.dtype)
        else:
            # Interleaved forward + reverse recurrences: two independent
            # dependency chains per step fill each other's latency bubbles.
            def step(t, carry):
                h_f, c_f, h_r, c_r = carry
                row_f = pl.multiple_of(t * Bp, Bp)
                row_r = pl.multiple_of((T - 1 - t) * Bp, Bp)
                g_f = (xp_sc[pl.ds(row_f, Bp), 0:G]
                       + jnp.dot(h_f.astype(_MATMUL_DTYPE), w_hh[0],
                                 preferred_element_type=jnp.float32))
                g_r = (xp_sc[pl.ds(row_r, Bp), G:2 * G]
                       + jnp.dot(h_r.astype(_MATMUL_DTYPE), w_hh[1],
                                 preferred_element_type=jnp.float32))
                h_f2, c_f2 = cell(g_f, c_f)
                h_r2, c_r2 = cell(g_r, c_r)
                act_sc[pl.ds(row_f, Bp), 0:H] = h_f2
                act_sc[pl.ds(row_r, Bp), H:2 * H] = h_r2
                return h_f2, c_f2, h_r2, c_r2

            init = (jnp.zeros((Bp, H), jnp.float32),) * 4
            h_f, c_f, h_r, c_r = lax.fori_loop(0, T, step, init,
                                               unroll=unroll)
            hlast_ref[2 * layer] = h_f.astype(hlast_ref.dtype)
            clast_ref[2 * layer] = c_f.astype(clast_ref.dtype)
            hlast_ref[2 * layer + 1] = h_r.astype(hlast_ref.dtype)
            clast_ref[2 * layer + 1] = c_r.astype(clast_ref.dtype)

    # Single full-width, lane-dense writeback of the final layer's output.
    out_ref[...] = act_sc[...].astype(out_ref.dtype)


def _lstm_stack(x2d, layer_params, *, seq_len, batch_p, hidden_size,
                num_dirs, out_dtype, unroll):
    T, Bp, H, D = seq_len, batch_p, hidden_size, num_dirs
    L = len(layer_params)

    kernel = functools.partial(
        _lstm_stack_kernel, hidden_size=H, seq_len=T, batch=Bp,
        num_dirs=D, num_layers=L, unroll=unroll)

    in_specs = [pl.BlockSpec(x2d.shape, lambda i: (0, 0))]
    flat_w = []
    for (w_ih, w_hh, b) in layer_params:
        in_specs += [pl.BlockSpec(w_ih.shape, lambda i: (0, 0)),
                     pl.BlockSpec(w_hh.shape, lambda i: (0, 0, 0)),
                     pl.BlockSpec(b.shape, lambda i: (0, 0))]
        flat_w += [w_ih, w_hh, b]

    return pl.pallas_call(
        kernel,
        out_shape=(jax.ShapeDtypeStruct((T * Bp, D * H), out_dtype),
                   jax.ShapeDtypeStruct((L * D, Bp, H), jnp.float32),
                   jax.ShapeDtypeStruct((L * D, Bp, H), jnp.float32)),
        grid_spec=pltpu.PrefetchScalarGridSpec(
            num_scalar_prefetch=0,
            grid=(1,),                 # single invocation; time loop in-kernel
            in_specs=in_specs,
            out_specs=(pl.BlockSpec((T * Bp, D * H), lambda i: (0, 0)),
                       pl.BlockSpec((L * D, Bp, H), lambda i: (0, 0, 0)),
                       pl.BlockSpec((L * D, Bp, H), lambda i: (0, 0, 0))),
            scratch_shapes=[pltpu.VMEM((T * Bp, D * 4 * H), jnp.float32),
                            pltpu.VMEM((T * Bp, D * H), jnp.float32)]),
        compiler_params=pltpu.CompilerParams(
            dimension_semantics=("arbitrary",),
            vmem_limit_bytes=64 * 1024 * 1024),
    )(x2d, *flat_w)


def init_lstm_params(key, input_size, hidden_size, num_layers, bidirectional):
    """Synthetic params in PyTorch nn.LSTM convention:
    per layer, per direction: w_ih (4H, in), w_hh (4H, H), b_ih (4H,), b_hh (4H,),
    gate order [i, f, g, o], uniform(-1/sqrt(H), 1/sqrt(H))."""
    D = 2 if bidirectional else 1
    k = 1.0 / float(hidden_size) ** 0.5
    params = []
    for layer in range(num_layers):
        in_feat = input_size if layer == 0 else hidden_size * D
        dirs = []
        for _d in range(D):
            key, k1, k2, k3, k4 = jax.random.split(key, 5)
            w_ih = jax.random.uniform(k1, (4 * hidden_size, in_feat),
                                      jnp.float32, -k, k)
            w_hh = jax.random.uniform(k2, (4 * hidden_size, hidden_size),
                                      jnp.float32, -k, k)
            b_ih = jax.random.uniform(k3, (4 * hidden_size,), jnp.float32, -k, k)
            b_hh = jax.random.uniform(k4, (4 * hidden_size,), jnp.float32, -k, k)
            dirs.append((w_ih, w_hh, b_ih, b_hh))
        params.append(dirs)
    return params


def prep_params(torch_params, hidden_size):
    """PyTorch layout -> kernel layout, done ONCE outside the kernel:
    transpose to (in, 4H)/(H, 4H), reorder gate blocks [i,f,g,o] -> [i,f,o,g],
    fuse b_ih+b_hh, concatenate directions column-wise (fused projection),
    cast matmul operands to bf16."""
    H = hidden_size

    def reorder(a):  # first axis is 4H; blocks i,f,g,o -> i,f,o,g
        return jnp.concatenate([a[:2 * H], a[3 * H:4 * H], a[2 * H:3 * H]],
                               axis=0)

    prepped = []
    for dirs in torch_params:
        w_ih_cols, b_cols, w_hh_list = [], [], []
        for (w_ih, w_hh, b_ih, b_hh) in dirs:
            w_ih_cols.append(reorder(w_ih).T)               # (in, 4H)
            w_hh_list.append(reorder(w_hh).T)               # (H, 4H)
            b_cols.append(reorder(b_ih + b_hh)[None, :])    # (1, 4H)
        w_ih_cat = jnp.concatenate(w_ih_cols, axis=1).astype(_MATMUL_DTYPE)
        w_hh_stack = jnp.stack(w_hh_list, axis=0).astype(_MATMUL_DTYPE)
        b_cat = jnp.concatenate(b_cols, axis=1).astype(jnp.float32)
        prepped.append((w_ih_cat, w_hh_stack, b_cat))
    return prepped


@functools.partial(jax.jit,
                   static_argnames=("hidden_size", "num_layers",
                                    "bidirectional"))
def conv_lstm_forward(x, params, *, hidden_size, num_layers, bidirectional):
    """Forward pass of Conv_LSTM.  x: (B, T, input_size), batch-first."""
    B, T, I = x.shape
    D = 2 if bidirectional else 1
    H = hidden_size
    assert len(params) == num_layers

    # Pad batch to a multiple of 8 sublanes so every per-step slab access in
    # the kernel is tile-aligned (padded rows are independent and dropped).
    Bp = -(-B // 8) * 8
    xt = jnp.transpose(x, (1, 0, 2))                 # (T, B, I) time-major
    if Bp != B:
        xt = jnp.pad(xt, ((0, 0), (0, Bp - B), (0, 0)))
    x2d = xt.reshape(T * Bp, I).astype(_MATMUL_DTYPE)

    out2d, h_last, _c_last = _lstm_stack(
        x2d, params, seq_len=T, batch_p=Bp, hidden_size=H, num_dirs=D,
        out_dtype=x.dtype, unroll=min(T, _TIME_UNROLL))

    out = out2d.reshape(T, Bp, D * H)[:, :B].transpose(1, 0, 2)  # (B, T, D*H)
    h_out = h_last[:, :B].astype(x.dtype)                        # (L*D, B, H)

    # nn.Dropout(p=0.2): identity in eval/inference mode.
    if hidden_size == 6:      # mirrors the PyTorch module's forward() branch
        return h_out
    return out


def lstm_ref(x, torch_params, hidden_size, bidirectional):
    """Pure-JAX f32 reference of nn.LSTM forward (batch_first, zero init)."""
    B, T, _ = x.shape
    H = hidden_size
    layer_in = x
    h_lasts = []
    for dirs in torch_params:
        outs = []
        for d, (w_ih, w_hh, b_ih, b_hh) in enumerate(dirs):
            h = jnp.zeros((B, H), jnp.float32)
            c = jnp.zeros((B, H), jnp.float32)
            order = range(T) if d == 0 else range(T - 1, -1, -1)
            hs = [None] * T
            for t in order:
                g = layer_in[:, t] @ w_ih.T + h @ w_hh.T + b_ih + b_hh
                i_g = jax.nn.sigmoid(g[:, :H])
                f_g = jax.nn.sigmoid(g[:, H:2 * H])
                g_g = jnp.tanh(g[:, 2 * H:3 * H])
                o_g = jax.nn.sigmoid(g[:, 3 * H:])
                c = f_g * c + i_g * g_g
                h = o_g * jnp.tanh(c)
                hs[t] = h
            outs.append(jnp.stack(hs, axis=1))       # (B, T, H)
            h_lasts.append(h)
        layer_in = jnp.concatenate(outs, axis=-1)    # (B, T, D*H)
    return layer_in, jnp.stack(h_lasts, axis=0)


if __name__ == "__main__":
    # Module hyperparameters (num_classes is unused in forward()).
    num_classes = 10
    input_size = 16
    hidden_size = 32
    num_layers = 2

    batch, seq = 2, 8

    key = jax.random.PRNGKey(0)
    key, xk = jax.random.split(key)
    x = jax.random.normal(xk, (batch, seq, input_size), jnp.float32)

    for bidirectional in (False, True):
        key, pk = jax.random.split(key)
        torch_params = init_lstm_params(pk, input_size, hidden_size,
                                        num_layers, bidirectional)
        params = prep_params(torch_params, hidden_size)

        out = conv_lstm_forward(x, params, hidden_size=hidden_size,
                                num_layers=num_layers,
                                bidirectional=bidirectional)
        out = jax.block_until_ready(out)
        D = 2 if bidirectional else 1
        assert out.shape == (batch, seq, D * hidden_size), out.shape

        # Correctness check against a pure-JAX f32 reference (loose tolerance:
        # the kernel runs its matmuls in bf16).
        ref_out, _ref_h = lstm_ref(x, torch_params, hidden_size, bidirectional)
        max_err = float(jnp.max(jnp.abs(out - ref_out)))
        assert max_err < 0.1, (bidirectional, max_err)

    print("KERNEL_OK")
</pallas_src>

<mosaic_0001>
module attributes {stable_mosaic.version = 11 : i64} {
  func.func @_lstm_stack_kernel(%arg0: i32, %arg1: memref<64x16xbf16, #tpu.memory_space<vmem>>, %arg2: memref<16x128xbf16, #tpu.memory_space<vmem>>, %arg3: memref<1x32x128xbf16, #tpu.memory_space<vmem>>, %arg4: memref<1x128xf32, #tpu.memory_space<vmem>>, %arg5: memref<32x128xbf16, #tpu.memory_space<vmem>>, %arg6: memref<1x32x128xbf16, #tpu.memory_space<vmem>>, %arg7: memref<1x128xf32, #tpu.memory_space<vmem>>, %arg8: memref<64x32xf32, #tpu.memory_space<vmem>>, %arg9: memref<2x8x32xf32, #tpu.memory_space<vmem>>, %arg10: memref<2x8x32xf32, #tpu.memory_space<vmem>>, %arg11: memref<64x128xf32, #tpu.memory_space<vmem>>, %arg12: memref<64x32xf32, #tpu.memory_space<vmem>>) attributes {dimension_semantics = [#tpu.dimension_semantics<arbitrary>], iteration_bounds = array<i64: 1>, scalar_prefetch = 0 : i64, scratch_operands = 2 : i64, tpu.core_type = #tpu.core_type<tc>, window_params = [{pipeline_mode = #tpu.pipeline_mode<synchronous>, transform_indices = @transform_0, window_bounds = array<i64: 64, 16>}, {pipeline_mode = #tpu.pipeline_mode<synchronous>, transform_indices = @transform_1, window_bounds = array<i64: 16, 128>}, {pipeline_mode = #tpu.pipeline_mode<synchronous>, transform_indices = @transform_2, window_bounds = array<i64: 1, 32, 128>}, {pipeline_mode = #tpu.pipeline_mode<synchronous>, transform_indices = @transform_3, window_bounds = array<i64: 1, 128>}, {pipeline_mode = #tpu.pipeline_mode<synchronous>, transform_indices = @transform_4, window_bounds = array<i64: 32, 128>}, {pipeline_mode = #tpu.pipeline_mode<synchronous>, transform_indices = @transform_5, window_bounds = array<i64: 1, 32, 128>}, {pipeline_mode = #tpu.pipeline_mode<synchronous>, transform_indices = @transform_6, window_bounds = array<i64: 1, 128>}, {pipeline_mode = #tpu.pipeline_mode<synchronous>, transform_indices = @transform_7, window_bounds = array<i64: 64, 32>}, {pipeline_mode = #tpu.pipeline_mode<synchronous>, transform_indices = @transform_8, window_bounds = array<i64: 2, 8, 32>}, {pipeline_mode = #tpu.pipeline_mode<synchronous>, transform_indices = @transform_9, window_bounds = array<i64: 2, 8, 32>}]} {
    %c0 = arith.constant 0 : index
    %c0_0 = arith.constant 0 : index
    %0 = vector.load %arg1[%c0, %c0_0] : memref<64x16xbf16, #tpu.memory_space<vmem>>, vector<64x16xbf16>
    %c0_1 = arith.constant 0 : index
    %c0_2 = arith.constant 0 : index
    %1 = vector.load %arg2[%c0_1, %c0_2] : memref<16x128xbf16, #tpu.memory_space<vmem>>, vector<16x128xbf16>
    %cst = arith.constant dense<0.000000e+00> : vector<64x128xf32>
    %2 = tpu.matmul %0, %1, %cst {dimension_numbers = #tpu.dot_dimension_numbers<[1], [0], [0], [1], [0, 0, 1, 1], [], []>} : vector<64x16xbf16>, vector<16x128xbf16>, vector<64x128xf32> -> vector<64x128xf32>
    %c0_3 = arith.constant 0 : index
    %c0_4 = arith.constant 0 : index
    %3 = vector.load %arg4[%c0_3, %c0_4] : memref<1x128xf32, #tpu.memory_space<vmem>>, vector<1x128xf32>
    %4 = vector.broadcast %3 : vector<1x128xf32> to vector<64x128xf32>
    %5 = arith.addf %2, %4 : vector<64x128xf32>
    %c0_5 = arith.constant 0 : index
    %c0_6 = arith.constant 0 : index
    %6 = vector.load %arg11[%c0_5, %c0_6] : memref<64x128xf32, #tpu.memory_space<vmem>>, vector<64x128xf32>
    tpu.vector_store %arg11[%c0_5, %c0_6], %5 {strides = array<i32>} : memref<64x128xf32, #tpu.memory_space<vmem>>, vector<64x128xf32>,
    %c0_7 = arith.constant 0 : index
    %c0_8 = arith.constant 0 : index
    %c0_9 = arith.constant 0 : index
    %7 = vector.load %arg3[%c0_7, %c0_8, %c0_9] : memref<1x32x128xbf16, #tpu.memory_space<vmem>>, vector<1x32x128xbf16>
    %8 = vector.shape_cast %7 : vector<1x32x128xbf16> to vector<32x128xbf16>
    %cst_10 = arith.constant 0.000000e+00 : f32
    %9 = vector.broadcast %cst_10 : f32 to vector<8x32xf32>
    %cst_11 = arith.constant 0.000000e+00 : f32
    %10 = vector.broadcast %cst_11 : f32 to vector<8x32xf32>
    %c0_i32 = arith.constant 0 : i32
    %c8_i32 = arith.constant 8 : i32
    %11 = arith.muli %c0_i32, %c8_i32 : i32
    %12 = tpu.assume_multiple %11, 8 : i32
    %13 = arith.index_cast %12 : i32 to index
    %c0_12 = arith.constant 0 : index
    %14 = vector.load %arg11[%13, %c0_12] : memref<64x128xf32, #tpu.memory_space<vmem>>, vector<8x128xf32>
    %15 = arith.truncf %9 : vector<8x32xf32> to vector<8x32xbf16>
    %cst_13 = arith.constant dense<0.000000e+00> : vector<8x128xf32>
    %16 = tpu.matmul %15, %8, %cst_13 {dimension_numbers = #tpu.dot_dimension_numbers<[1], [0], [0], [1], [0, 0, 1, 1], [], []>} : vector<8x32xbf16>, vector<32x128xbf16>, vector<8x128xf32> -> vector<8x128xf32>
    %17 = arith.addf %14, %16 : vector<8x128xf32>
    %18 = vector.extract_strided_slice %17 {offsets = [0, 0], sizes = [8, 96], strides = [1, 1]} : vector<8x128xf32> to vector<8x96xf32>
    %19 = arith.negf %18 : vector<8x96xf32>
    %20 = math.exp %19 : vector<8x96xf32>
    %cst_14 = arith.constant 1.000000e+00 : f32
    %21 = vector.broadcast %cst_14 : f32 to vector<8x96xf32>
    %22 = arith.addf %21, %20 : vector<8x96xf32>
    %23 = arith.divf %21, %22 : vector<8x96xf32>
    %24 = vector.extract_strided_slice %23 {offsets = [0, 0], sizes = [8, 32], strides = [1, 1]} : vector<8x96xf32> to vector<8x32xf32>
    %25 = vector.extract_strided_slice %23 {offsets = [0, 32], sizes = [8, 32], strides = [1, 1]} : vector<8x96xf32> to vector<8x32xf32>
    %26 = vector.extract_strided_slice %23 {offsets = [0, 64], sizes = [8, 32], strides = [1, 1]} : vector<8x96xf32> to vector<8x32xf32>
    %27 = vector.extract_strided_slice %17 {offsets = [0, 96], sizes = [8, 32], strides = [1, 1]} : vector<8x128xf32> to vector<8x32xf32>
    %28 = math.tanh %27 : vector<8x32xf32>
    %29 = arith.mulf %25, %10 : vector<8x32xf32>
    %30 = arith.mulf %24, %28 : vector<8x32xf32>
    %31 = arith.addf %29, %30 : vector<8x32xf32>
    %32 = math.tanh %31 : vector<8x32xf32>
    %33 = arith.mulf %26, %32 : vector<8x32xf32>
    %34 = arith.index_cast %12 : i32 to index
    %c0_15 = arith.constant 0 : index
    %35 = vector.load %arg12[%34, %c0_15] : memref<64x32xf32, #tpu.memory_space<vmem>>, vector<8x32xf32>
    tpu.vector_store %arg12[%34, %c0_15], %33 {strides = array<i32>} : memref<64x32xf32, #tpu.memory_space<vmem>>, vector<8x32xf32>,
    %c1_i32 = arith.constant 1 : i32
    %c8_i32_16 = arith.constant 8 : i32
    %36 = arith.muli %c1_i32, %c8_i32_16 : i32
    %37 = tpu.assume_multiple %36, 8 : i32
    %38 = arith.index_cast %37 : i32 to index
    %c0_17 = arith.constant 0 : index
    %39 = vector.load %arg11[%38, %c0_17] : memref<64x128xf32, #tpu.memory_space<vmem>>, vector<8x128xf32>
    %40 = arith.truncf %33 : vector<8x32xf32> to vector<8x32xbf16>
    %cst_18 = arith.constant dense<0.000000e+00> : vector<8x128xf32>
    %41 = tpu.matmul %40, %8, %cst_18 {dimension_numbers = #tpu.dot_dimension_numbers<[1], [0], [0], [1], [0, 0, 1, 1], [], []>} : vector<8x32xbf16>, vector<32x128xbf16>, vector<8x128xf32> -> vector<8x128xf32>
    %42 = arith.addf %39, %41 : vector<8x128xf32>
    %43 = vector.extract_strided_slice %42 {offsets = [0, 0], sizes = [8, 96], strides = [1, 1]} : vector<8x128xf32> to vector<8x96xf32>
    %44 = arith.negf %43 : vector<8x96xf32>
    %45 = math.exp %44 : vector<8x96xf32>
    %cst_19 = arith.constant 1.000000e+00 : f32
    %46 = vector.broadcast %cst_19 : f32 to vector<8x96xf32>
    %47 = arith.addf %46, %45 : vector<8x96xf32>
    %48 = arith.divf %46, %47 : vector<8x96xf32>
    %49 = vector.extract_strided_slice %48 {offsets = [0, 0], sizes = [8, 32], strides = [1, 1]} : vector<8x96xf32> to vector<8x32xf32>
    %50 = vector.extract_strided_slice %48 {offsets = [0, 32], sizes = [8, 32], strides = [1, 1]} : vector<8x96xf32> to vector<8x32xf32>
    %51 = vector.extract_strided_slice %48 {offsets = [0, 64], sizes = [8, 32], strides = [1, 1]} : vector<8x96xf32> to vector<8x32xf32>
    %52 = vector.extract_strided_slice %42 {offsets = [0, 96], sizes = [8, 32], strides = [1, 1]} : vector<8x128xf32> to vector<8x32xf32>
    %53 = math.tanh %52 : vector<8x32xf32>
    %54 = arith.mulf %50, %31 : vector<8x32xf32>
    %55 = arith.mulf %49, %53 : vector<8x32xf32>
    %56 = arith.addf %54, %55 : vector<8x32xf32>
    %57 = math.tanh %56 : vector<8x32xf32>
    %58 = arith.mulf %51, %57 : vector<8x32xf32>
    %59 = arith.index_cast %37 : i32 to index
    %c0_20 = arith.constant 0 : index
    %60 = vector.load %arg12[%59, %c0_20] : memref<64x32xf32, #tpu.memory_space<vmem>>, vector<8x32xf32>
    tpu.vector_store %arg12[%59, %c0_20], %58 {strides = array<i32>} : memref<64x32xf32, #tpu.memory_space<vmem>>, vector<8x32xf32>,
    %c2_i32 = arith.constant 2 : i32
    %c8_i32_21 = arith.constant 8 : i32
    %61 = arith.muli %c2_i32, %c8_i32_21 : i32
    %62 = tpu.assume_multiple %61, 8 : i32
    %63 = arith.index_cast %62 : i32 to index
    %c0_22 = arith.constant 0 : index
    %64 = vector.load %arg11[%63, %c0_22] : memref<64x128xf32, #tpu.memory_space<vmem>>, vector<8x128xf32>
    %65 = arith.truncf %58 : vector<8x32xf32> to vector<8x32xbf16>
    %cst_23 = arith.constant dense<0.000000e+00> : vector<8x128xf32>
    %66 = tpu.matmul %65, %8, %cst_23 {dimension_numbers = #tpu.dot_dimension_numbers<[1], [0], [0], [1], [0, 0, 1, 1], [], []>} : vector<8x32xbf16>, vector<32x128xbf16>, vector<8x128xf32> -> vector<8x128xf32>
    %67 = arith.addf %64, %66 : vector<8x128xf32>
    %68 = vector.extract_strided_slice %67 {offsets = [0, 0], sizes = [8, 96], strides = [1, 1]} : vector<8x128xf32> to vector<8x96xf32>
    %69 = arith.negf %68 : vector<8x96xf32>
    %70 = math.exp %69 : vector<8x96xf32>
    %cst_24 = arith.constant 1.000000e+00 : f32
    %71 = vector.broadcast %cst_24 : f32 to vector<8x96xf32>
    %72 = arith.addf %71, %70 : vector<8x96xf32>
    %73 = arith.divf %71, %72 : vector<8x96xf32>
    %74 = vector.extract_strided_slice %73 {offsets = [0, 0], sizes = [8, 32], strides = [1, 1]} : vector<8x96xf32> to vector<8x32xf32>
    %75 = vector.extract_strided_slice %73 {offsets = [0, 32], sizes = [8, 32], strides = [1, 1]} : vector<8x96xf32> to vector<8x32xf32>
    %76 = vector.extract_strided_slice %73 {offsets = [0, 64], sizes = [8, 32], strides = [1, 1]} : vector<8x96xf32> to vector<8x32xf32>
    %77 = vector.extract_strided_slice %67 {offsets = [0, 96], sizes = [8, 32], strides = [1, 1]} : vector<8x128xf32> to vector<8x32xf32>
    %78 = math.tanh %77 : vector<8x32xf32>
    %79 = arith.mulf %75, %56 : vector<8x32xf32>
    %80 = arith.mulf %74, %78 : vector<8x32xf32>
    %81 = arith.addf %79, %80 : vector<8x32xf32>
    %82 = math.tanh %81 : vector<8x32xf32>
    %83 = arith.mulf %76, %82 : vector<8x32xf32>
    %84 = arith.index_cast %62 : i32 to index
    %c0_25 = arith.constant 0 : index
    %85 = vector.load %arg12[%84, %c0_25] : memref<64x32xf32, #tpu.memory_space<vmem>>, vector<8x32xf32>
    tpu.vector_store %arg12[%84, %c0_25], %83 {strides = array<i32>} : memref<64x32xf32, #tpu.memory_space<vmem>>, vector<8x32xf32>,
    %c3_i32 = arith.constant 3 : i32
    %c8_i32_26 = arith.constant 8 : i32
    %86 = arith.muli %c3_i32, %c8_i32_26 : i32
    %87 = tpu.assume_multiple %86, 8 : i32
    %88 = arith.index_cast %87 : i32 to index
    %c0_27 = arith.constant 0 : index
    %89 = vector.load %arg11[%88, %c0_27] : memref<64x128xf32, #tpu.memory_space<vmem>>, vector<8x128xf32>
    %90 = arith.truncf %83 : vector<8x32xf32> to vector<8x32xbf16>
    %cst_28 = arith.constant dense<0.000000e+00> : vector<8x128xf32>
    %91 = tpu.matmul %90, %8, %cst_28 {dimension_numbers = #tpu.dot_dimension_numbers<[1], [0], [0], [1], [0, 0, 1, 1], [], []>} : vector<8x32xbf16>, vector<32x128xbf16>, vector<8x128xf32> -> vector<8x128xf32>
    %92 = arith.addf %89, %91 : vector<8x128xf32>
    %93 = vector.extract_strided_slice %92 {offsets = [0, 0], sizes = [8, 96], strides = [1, 1]} : vector<8x128xf32> to vector<8x96xf32>
    %94 = arith.negf %93 : vector<8x96xf32>
    %95 = math.exp %94 : vector<8x96xf32>
    %cst_29 = arith.constant 1.000000e+00 : f32
    %96 = vector.broadcast %cst_29 : f32 to vector<8x96xf32>
    %97 = arith.addf %96, %95 : vector<8x96xf32>
    %98 = arith.divf %96, %97 : vector<8x96xf32>
    %99 = vector.extract_strided_slice %98 {offsets = [0, 0], sizes = [8, 32], strides = [1, 1]} : vector<8x96xf32> to vector<8x32xf32>
    %100 = vector.extract_strided_slice %98 {offsets = [0, 32], sizes = [8, 32], strides = [1, 1]} : vector<8x96xf32> to vector<8x32xf32>
    %101 = vector.extract_strided_slice %98 {offsets = [0, 64], sizes = [8, 32], strides = [1, 1]} : vector<8x96xf32> to vector<8x32xf32>
    %102 = vector.extract_strided_slice %92 {offsets = [0, 96], sizes = [8, 32], strides = [1, 1]} : vector<8x128xf32> to vector<8x32xf32>
    %103 = math.tanh %102 : vector<8x32xf32>
    %104 = arith.mulf %100, %81 : vector<8x32xf32>
    %105 = arith.mulf %99, %103 : vector<8x32xf32>
    %106 = arith.addf %104, %105 : vector<8x32xf32>
    %107 = math.tanh %106 : vector<8x32xf32>
    %108 = arith.mulf %101, %107 : vector<8x32xf32>
    %109 = arith.index_cast %87 : i32 to index
    %c0_30 = arith.constant 0 : index
    %110 = vector.load %arg12[%109, %c0_30] : memref<64x32xf32, #tpu.memory_space<vmem>>, vector<8x32xf32>
    tpu.vector_store %arg12[%109, %c0_30], %108 {strides = array<i32>} : memref<64x32xf32, #tpu.memory_space<vmem>>, vector<8x32xf32>,
    %c4_i32 = arith.constant 4 : i32
    %c8_i32_31 = arith.constant 8 : i32
    %111 = arith.muli %c4_i32, %c8_i32_31 : i32
    %112 = tpu.assume_multiple %111, 8 : i32
    %113 = arith.index_cast %112 : i32 to index
    %c0_32 = arith.constant 0 : index
    %114 = vector.load %arg11[%113, %c0_32] : memref<64x128xf32, #tpu.memory_space<vmem>>, vector<8x128xf32>
    %115 = arith.truncf %108 : vector<8x32xf32> to vector<8x32xbf16>
    %cst_33 = arith.constant dense<0.000000e+00> : vector<8x128xf32>
    %116 = tpu.matmul %115, %8, %cst_33 {dimension_numbers = #tpu.dot_dimension_numbers<[1], [0], [0], [1], [0, 0, 1, 1], [], []>} : vector<8x32xbf16>, vector<32x128xbf16>, vector<8x128xf32> -> vector<8x128xf32>
    %117 = arith.addf %114, %116 : vector<8x128xf32>
    %118 = vector.extract_strided_slice %117 {offsets = [0, 0], sizes = [8, 96], strides = [1, 1]} : vector<8x128xf32> to vector<8x96xf32>
    %119 = arith.negf %118 : vector<8x96xf32>
    %120 = math.exp %119 : vector<8x96xf32>
    %cst_34 = arith.constant 1.000000e+00 : f32
    %121 = vector.broadcast %cst_34 : f32 to vector<8x96xf32>
    %122 = arith.addf %121, %120 : vector<8x96xf32>
    %123 = arith.divf %121, %122 : vector<8x96xf32>
    %124 = vector.extract_strided_slice %123 {offsets = [0, 0], sizes = [8, 32], strides = [1, 1]} : vector<8x96xf32> to vector<8x32xf32>
    %125 = vector.extract_strided_slice %123 {offsets = [0, 32], sizes = [8, 32], strides = [1, 1]} : vector<8x96xf32> to vector<8x32xf32>
    %126 = vector.extract_strided_slice %123 {offsets = [0, 64], sizes = [8, 32], strides = [1, 1]} : vector<8x96xf32> to vector<8x32xf32>
    %127 = vector.extract_strided_slice %117 {offsets = [0, 96], sizes = [8, 32], strides = [1, 1]} : vector<8x128xf32> to vector<8x32xf32>
    %128 = math.tanh %127 : vector<8x32xf32>
    %129 = arith.mulf %125, %106 : vector<8x32xf32>
    %130 = arith.mulf %124, %128 : vector<8x32xf32>
    %131 = arith.addf %129, %130 : vector<8x32xf32>
    %132 = math.tanh %131 : vector<8x32xf32>
    %133 = arith.mulf %126, %132 : vector<8x32xf32>
    %134 = arith.index_cast %112 : i32 to index
    %c0_35 = arith.constant 0 : index
    %135 = vector.load %arg12[%134, %c0_35] : memref<64x32xf32, #tpu.memory_space<vmem>>, vector<8x32xf32>
    tpu.vector_store %arg12[%134, %c0_35], %133 {strides = array<i32>} : memref<64x32xf32, #tpu.memory_space<vmem>>, vector<8x32xf32>,
    %c5_i32 = arith.constant 5 : i32
    %c8_i32_36 = arith.constant 8 : i32
    %136 = arith.muli %c5_i32, %c8_i32_36 : i32
    %137 = tpu.assume_multiple %136, 8 : i32
    %138 = arith.index_cast %137 : i32 to index
    %c0_37 = arith.constant 0 : index
    %139 = vector.load %arg11[%138, %c0_37] : memref<64x128xf32, #tpu.memory_space<vmem>>, vector<8x128xf32>
    %140 = arith.truncf %133 : vector<8x32xf32> to vector<8x32xbf16>
    %cst_38 = arith.constant dense<0.000000e+00> : vector<8x128xf32>
    %141 = tpu.matmul %140, %8, %cst_38 {dimension_numbers = #tpu.dot_dimension_numbers<[1], [0], [0], [1], [0, 0, 1, 1], [], []>} : vector<8x32xbf16>, vector<32x128xbf16>, vector<8x128xf32> -> vector<8x128xf32>
    %142 = arith.addf %139, %141 : vector<8x128xf32>
    %143 = vector.extract_strided_slice %142 {offsets = [0, 0], sizes = [8, 96], strides = [1, 1]} : vector<8x128xf32> to vector<8x96xf32>
    %144 = arith.negf %143 : vector<8x96xf32>
    %145 = math.exp %144 : vector<8x96xf32>
    %cst_39 = arith.constant 1.000000e+00 : f32
    %146 = vector.broadcast %cst_39 : f32 to vector<8x96xf32>
    %147 = arith.addf %146, %145 : vector<8x96xf32>
    %148 = arith.divf %146, %147 : vector<8x96xf32>
    %149 = vector.extract_strided_slice %148 {offsets = [0, 0], sizes = [8, 32], strides = [1, 1]} : vector<8x96xf32> to vector<8x32xf32>
    %150 = vector.extract_strided_slice %148 {offsets = [0, 32], sizes = [8, 32], strides = [1, 1]} : vector<8x96xf32> to vector<8x32xf32>
    %151 = vector.extract_strided_slice %148 {offsets = [0, 64], sizes = [8, 32], strides = [1, 1]} : vector<8x96xf32> to vector<8x32xf32>
    %152 = vector.extract_strided_slice %142 {offsets = [0, 96], sizes = [8, 32], strides = [1, 1]} : vector<8x128xf32> to vector<8x32xf32>
    %153 = math.tanh %152 : vector<8x32xf32>
    %154 = arith.mulf %150, %131 : vector<8x32xf32>
    %155 = arith.mulf %149, %153 : vector<8x32xf32>
    %156 = arith.addf %154, %155 : vector<8x32xf32>
    %157 = math.tanh %156 : vector<8x32xf32>
    %158 = arith.mulf %151, %157 : vector<8x32xf32>
    %159 = arith.index_cast %137 : i32 to index
    %c0_40 = arith.constant 0 : index
    %160 = vector.load %arg12[%159, %c0_40] : memref<64x32xf32, #tpu.memory_space<vmem>>, vector<8x32xf32>
    tpu.vector_store %arg12[%159, %c0_40], %158 {strides = array<i32>} : memref<64x32xf32, #tpu.memory_space<vmem>>, vector<8x32xf32>,
    %c6_i32 = arith.constant 6 : i32
    %c8_i32_41 = arith.constant 8 : i32
    %161 = arith.muli %c6_i32, %c8_i32_41 : i32
    %162 = tpu.assume_multiple %161, 8 : i32
    %163 = arith.index_cast %162 : i32 to index
    %c0_42 = arith.constant 0 : index
    %164 = vector.load %arg11[%163, %c0_42] : memref<64x128xf32, #tpu.memory_space<vmem>>, vector<8x128xf32>
    %165 = arith.truncf %158 : vector<8x32xf32> to vector<8x32xbf16>
    %cst_43 = arith.constant dense<0.000000e+00> : vector<8x128xf32>
    %166 = tpu.matmul %165, %8, %cst_43 {dimension_numbers = #tpu.dot_dimension_numbers<[1], [0], [0], [1], [0, 0, 1, 1], [], []>} : vector<8x32xbf16>, vector<32x128xbf16>, vector<8x128xf32> -> vector<8x128xf32>
    %167 = arith.addf %164, %166 : vector<8x128xf32>
    %168 = vector.extract_strided_slice %167 {offsets = [0, 0], sizes = [8, 96], strides = [1, 1]} : vector<8x128xf32> to vector<8x96xf32>
    %169 = arith.negf %168 : vector<8x96xf32>
    %170 = math.exp %169 : vector<8x96xf32>
    %cst_44 = arith.constant 1.000000e+00 : f32
    %171 = vector.broadcast %cst_44 : f32 to vector<8x96xf32>
    %172 = arith.addf %171, %170 : vector<8x96xf32>
    %173 = arith.divf %171, %172 : vector<8x96xf32>
    %174 = vector.extract_strided_slice %173 {offsets = [0, 0], sizes = [8, 32], strides = [1, 1]} : vector<8x96xf32> to vector<8x32xf32>
    %175 = vector.extract_strided_slice %173 {offsets = [0, 32], sizes = [8, 32], strides = [1, 1]} : vector<8x96xf32> to vector<8x32xf32>
    %176 = vector.extract_strided_slice %173 {offsets = [0, 64], sizes = [8, 32], strides = [1, 1]} : vector<8x96xf32> to vector<8x32xf32>
    %177 = vector.extract_strided_slice %167 {offsets = [0, 96], sizes = [8, 32], strides = [1, 1]} : vector<8x128xf32> to vector<8x32xf32>
    %178 = math.tanh %177 : vector<8x32xf32>
    %179 = arith.mulf %175, %156 : vector<8x32xf32>
    %180 = arith.mulf %174, %178 : vector<8x32xf32>
    %181 = arith.addf %179, %180 : vector<8x32xf32>
    %182 = math.tanh %181 : vector<8x32xf32>
    %183 = arith.mulf %176, %182 : vector<8x32xf32>
    %184 = arith.index_cast %162 : i32 to index
    %c0_45 = arith.constant 0 : index
    %185 = vector.load %arg12[%184, %c0_45] : memref<64x32xf32, #tpu.memory_space<vmem>>, vector<8x32xf32>
    tpu.vector_store %arg12[%184, %c0_45], %183 {strides = array<i32>} : memref<64x32xf32, #tpu.memory_space<vmem>>, vector<8x32xf32>,
    %c7_i32 = arith.constant 7 : i32
    %c8_i32_46 = arith.constant 8 : i32
    %186 = arith.muli %c7_i32, %c8_i32_46 : i32
    %187 = tpu.assume_multiple %186, 8 : i32
    %188 = arith.index_cast %187 : i32 to index
    %c0_47 = arith.constant 0 : index
    %189 = vector.load %arg11[%188, %c0_47] : memref<64x128xf32, #tpu.memory_space<vmem>>, vector<8x128xf32>
    %190 = arith.truncf %183 : vector<8x32xf32> to vector<8x32xbf16>
    %cst_48 = arith.constant dense<0.000000e+00> : vector<8x128xf32>
    %191 = tpu.matmul %190, %8, %cst_48 {dimension_numbers = #tpu.dot_dimension_numbers<[1], [0], [0], [1], [0, 0, 1, 1], [], []>} : vector<8x32xbf16>, vector<32x128xbf16>, vector<8x128xf32> -> vector<8x128xf32>
    %192 = arith.addf %189, %191 : vector<8x128xf32>
    %193 = vector.extract_strided_slice %192 {offsets = [0, 0], sizes = [8, 96], strides = [1, 1]} : vector<8x128xf32> to vector<8x96xf32>
    %194 = arith.negf %193 : vector<8x96xf32>
    %195 = math.exp %194 : vector<8x96xf32>
    %cst_49 = arith.constant 1.000000e+00 : f32
    %196 = vector.broadcast %cst_49 : f32 to vector<8x96xf32>
    %197 = arith.addf %196, %195 : vector<8x96xf32>
    %198 = arith.divf %196, %197 : vector<8x96xf32>
    %199 = vector.extract_strided_slice %198 {offsets = [0, 0], sizes = [8, 32], strides = [1, 1]} : vector<8x96xf32> to vector<8x32xf32>
    %200 = vector.extract_strided_slice %198 {offsets = [0, 32], sizes = [8, 32], strides = [1, 1]} : vector<8x96xf32> to vector<8x32xf32>
    %201 = vector.extract_strided_slice %198 {offsets = [0, 64], sizes = [8, 32], strides = [1, 1]} : vector<8x96xf32> to vector<8x32xf32>
    %202 = vector.extract_strided_slice %192 {offsets = [0, 96], sizes = [8, 32], strides = [1, 1]} : vector<8x128xf32> to vector<8x32xf32>
    %203 = math.tanh %202 : vector<8x32xf32>
    %204 = arith.mulf %200, %181 : vector<8x32xf32>
    %205 = arith.mulf %199, %203 : vector<8x32xf32>
    %206 = arith.addf %204, %205 : vector<8x32xf32>
    %207 = math.tanh %206 : vector<8x32xf32>
    %208 = arith.mulf %201, %207 : vector<8x32xf32>
    %209 = arith.index_cast %187 : i32 to index
    %c0_50 = arith.constant 0 : index
    %210 = vector.load %arg12[%209, %c0_50] : memref<64x32xf32, #tpu.memory_space<vmem>>, vector<8x32xf32>
    tpu.vector_store %arg12[%209, %c0_50], %208 {strides = array<i32>} : memref<64x32xf32, #tpu.memory_space<vmem>>, vector<8x32xf32>,
    %c8_i32_51 = arith.constant 8 : i32
    %c0_52 = arith.constant 0 : index
    %c0_53 = arith.constant 0 : index
    %c0_54 = arith.constant 0 : index
    %211 = vector.load %arg9[%c0_52, %c0_53, %c0_54] : memref<2x8x32xf32, #tpu.memory_space<vmem>>, vector<1x8x32xf32>
    %212 = vector.shape_cast %211 : vector<1x8x32xf32> to vector<8x32xf32>
    %213 = vector.shape_cast %208 : vector<8x32xf32> to vector<1x8x32xf32>
    tpu.vector_store %arg9[%c0_52, %c0_53, %c0_54], %213 {strides = array<i32>} : memref<2x8x32xf32, #tpu.memory_space<vmem>>, vector<1x8x32xf32>,
    %c0_55 = arith.constant 0 : index
    %c0_56 = arith.constant 0 : index
    %c0_57 = arith.constant 0 : index
    %214 = vector.load %arg10[%c0_55, %c0_56, %c0_57] : memref<2x8x32xf32, #tpu.memory_space<vmem>>, vector<1x8x32xf32>
    %215 = vector.shape_cast %214 : vector<1x8x32xf32> to vector<8x32xf32>
    %216 = vector.shape_cast %206 : vector<8x32xf32> to vector<1x8x32xf32>
    tpu.vector_store %arg10[%c0_55, %c0_56, %c0_57], %216 {strides = array<i32>} : memref<2x8x32xf32, #tpu.memory_space<vmem>>, vector<1x8x32xf32>,
    %c0_58 = arith.constant 0 : index
    %c0_59 = arith.constant 0 : index
    %217 = vector.load %arg12[%c0_58, %c0_59] : memref<64x32xf32, #tpu.memory_space<vmem>>, vector<64x32xf32>
    %218 = arith.truncf %217 : vector<64x32xf32> to vector<64x32xbf16>
    %c0_60 = arith.constant 0 : index
    %c0_61 = arith.constant 0 : index
    %219 = vector.load %arg5[%c0_60, %c0_61] : memref<32x128xbf16, #tpu.memory_space<vmem>>, vector<32x128xbf16>
    %cst_62 = arith.constant dense<0.000000e+00> : vector<64x128xf32>
    %220 = tpu.matmul %218, %219, %cst_62 {dimension_numbers = #tpu.dot_dimension_numbers<[1], [0], [0], [1], [0, 0, 1, 1], [], []>} : vector<64x32xbf16>, vector<32x128xbf16>, vector<64x128xf32> -> vector<64x128xf32>
    %c0_63 = arith.constant 0 : index
    %c0_64 = arith.constant 0 : index
    %221 = vector.load %arg7[%c0_63, %c0_64] : memref<1x128xf32, #tpu.memory_space<vmem>>, vector<1x128xf32>
    %222 = vector.broadcast %221 : vector<1x128xf32> to vector<64x128xf32>
    %223 = arith.addf %220, %222 : vector<64x128xf32>
    %c0_65 = arith.constant 0 : index
    %c0_66 = arith.constant 0 : index
    %224 = vector.load %arg11[%c0_65, %c0_66] : memref<64x128xf32, #tpu.memory_space<vmem>>, vector<64x128xf32>
    tpu.vector_store %arg11[%c0_65, %c0_66], %223 {strides = array<i32>} : memref<64x128xf32, #tpu.memory_space<vmem>>, vector<64x128xf32>,
    %c0_67 = arith.constant 0 : index
    %c0_68 = arith.constant 0 : index
    %c0_69 = arith.constant 0 : index
    %225 = vector.load %arg6[%c0_67, %c0_68, %c0_69] : memref<1x32x128xbf16, #tpu.memory_space<vmem>>, vector<1x32x128xbf16>
    %226 = vector.shape_cast %225 : vector<1x32x128xbf16> to vector<32x128xbf16>
    %cst_70 = arith.constant 0.000000e+00 : f32
    %227 = vector.broadcast %cst_70 : f32 to vector<8x32xf32>
    %cst_71 = arith.constant 0.000000e+00 : f32
    %228 = vector.broadcast %cst_71 : f32 to vector<8x32xf32>
    %c0_i32_72 = arith.constant 0 : i32
    %c8_i32_73 = arith.constant 8 : i32
    %229 = arith.muli %c0_i32_72, %c8_i32_73 : i32
    %230 = tpu.assume_multiple %229, 8 : i32
    %231 = arith.index_cast %230 : i32 to index
    %c0_74 = arith.constant 0 : index
    %232 = vector.load %arg11[%231, %c0_74] : memref<64x128xf32, #tpu.memory_space<vmem>>, vector<8x128xf32>
    %233 = arith.truncf %227 : vector<8x32xf32> to vector<8x32xbf16>
    %cst_75 = arith.constant dense<0.000000e+00> : vector<8x128xf32>
    %234 = tpu.matmul %233, %226, %cst_75 {dimension_numbers = #tpu.dot_dimension_numbers<[1], [0], [0], [1], [0, 0, 1, 1], [], []>} : vector<8x32xbf16>, vector<32x128xbf16>, vector<8x128xf32> -> vector<8x128xf32>
    %235 = arith.addf %232, %234 : vector<8x128xf32>
    %236 = vector.extract_strided_slice %235 {offsets = [0, 0], sizes = [8, 96], strides = [1, 1]} : vector<8x128xf32> to vector<8x96xf32>
    %237 = arith.negf %236 : vector<8x96xf32>
    %238 = math.exp %237 : vector<8x96xf32>
    %cst_76 = arith.constant 1.000000e+00 : f32
    %239 = vector.broadcast %cst_76 : f32 to vector<8x96xf32>
    %240 = arith.addf %239, %238 : vector<8x96xf32>
    %241 = arith.divf %239, %240 : vector<8x96xf32>
    %242 = vector.extract_strided_slice %241 {offsets = [0, 0], sizes = [8, 32], strides = [1, 1]} : vector<8x96xf32> to vector<8x32xf32>
    %243 = vector.extract_strided_slice %241 {offsets = [0, 32], sizes = [8, 32], strides = [1, 1]} : vector<8x96xf32> to vector<8x32xf32>
    %244 = vector.extract_strided_slice %241 {offsets = [0, 64], sizes = [8, 32], strides = [1, 1]} : vector<8x96xf32> to vector<8x32xf32>
    %245 = vector.extract_strided_slice %235 {offsets = [0, 96], sizes = [8, 32], strides = [1, 1]} : vector<8x128xf32> to vector<8x32xf32>
    %246 = math.tanh %245 : vector<8x32xf32>
    %247 = arith.mulf %243, %228 : vector<8x32xf32>
    %248 = arith.mulf %242, %246 : vector<8x32xf32>
    %249 = arith.addf %247, %248 : vector<8x32xf32>
    %250 = math.tanh %249 : vector<8x32xf32>
    %251 = arith.mulf %244, %250 : vector<8x32xf32>
    %252 = arith.index_cast %230 : i32 to index
    %c0_77 = arith.constant 0 : index
    %253 = vector.load %arg12[%252, %c0_77] : memref<64x32xf32, #tpu.memory_space<vmem>>, vector<8x32xf32>
    tpu.vector_store %arg12[%252, %c0_77], %251 {strides = array<i32>} : memref<64x32xf32, #tpu.memory_space<vmem>>, vector<8x32xf32>,
    %c1_i32_78 = arith.constant 1 : i32
    %c8_i32_79 = arith.constant 8 : i32
    %254 = arith.muli %c1_i32_78, %c8_i32_79 : i32
    %255 = tpu.assume_multiple %254, 8 : i32
    %256 = arith.index_cast %255 : i32 to index
    %c0_80 = arith.constant 0 : index
    %257 = vector.load %arg11[%256, %c0_80] : memref<64x128xf32, #tpu.memory_space<vmem>>, vector<8x128xf32>
    %258 = arith.truncf %251 : vector<8x32xf32> to vector<8x32xbf16>
    %cst_81 = arith.constant dense<0.000000e+00> : vector<8x128xf32>
    %259 = tpu.matmul %258, %226, %cst_81 {dimension_numbers = #tpu.dot_dimension_numbers<[1], [0], [0], [1], [0, 0, 1, 1], [], []>} : vector<8x32xbf16>, vector<32x128xbf16>, vector<8x128xf32> -> vector<8x128xf32>
    %260 = arith.addf %257, %259 : vector<8x128xf32>
    %261 = vector.extract_strided_slice %260 {offsets = [0, 0], sizes = [8, 96], strides = [1, 1]} : vector<8x128xf32> to vector<8x96xf32>
    %262 = arith.negf %261 : vector<8x96xf32>
    %263 = math.exp %262 : vector<8x96xf32>
    %cst_82 = arith.constant 1.000000e+00 : f32
    %264 = vector.broadcast %cst_82 : f32 to vector<8x96xf32>
    %265 = arith.addf %264, %263 : vector<8x96xf32>
    %266 = arith.divf %264, %265 : vector<8x96xf32>
    %267 = vector.extract_strided_slice %266 {offsets = [0, 0], sizes = [8, 32], strides = [1, 1]} : vector<8x96xf32> to vector<8x32xf32>
    %268 = vector.extract_strided_slice %266 {offsets = [0, 32], sizes = [8, 32], strides = [1, 1]} : vector<8x96xf32> to vector<8x32xf32>
    %269 = vector.extract_strided_slice %266 {offsets = [0, 64], sizes = [8, 32], strides = [1, 1]} : vector<8x96xf32> to vector<8x32xf32>
    %270 = vector.extract_strided_slice %260 {offsets = [0, 96], sizes = [8, 32], strides = [1, 1]} : vector<8x128xf32> to vector<8x32xf32>
    %271 = math.tanh %270 : vector<8x32xf32>
    %272 = arith.mulf %268, %249 : vector<8x32xf32>
    %273 = arith.mulf %267, %271 : vector<8x32xf32>
    %274 = arith.addf %272, %273 : vector<8x32xf32>
    %275 = math.tanh %274 : vector<8x32xf32>
    %276 = arith.mulf %269, %275 : vector<8x32xf32>
    %277 = arith.index_cast %255 : i32 to index
    %c0_83 = arith.constant 0 : index
    %278 = vector.load %arg12[%277, %c0_83] : memref<64x32xf32, #tpu.memory_space<vmem>>, vector<8x32xf32>
    tpu.vector_store %arg12[%277, %c0_83], %276 {strides = array<i32>} : memref<64x32xf32, #tpu.memory_space<vmem>>, vector<8x32xf32>,
    %c2_i32_84 = arith.constant 2 : i32
    %c8_i32_85 = arith.constant 8 : i32
    %279 = arith.muli %c2_i32_84, %c8_i32_85 : i32
    %280 = tpu.assume_multiple %279, 8 : i32
    %281 = arith.index_cast %280 : i32 to index
    %c0_86 = arith.constant 0 : index
    %282 = vector.load %arg11[%281, %c0_86] : memref<64x128xf32, #tpu.memory_space<vmem>>, vector<8x128xf32>
    %283 = arith.truncf %276 : vector<8x32xf32> to vector<8x32xbf16>
    %cst_87 = arith.constant dense<0.000000e+00> : vector<8x128xf32>
    %284 = tpu.matmul %283, %226, %cst_87 {dimension_numbers = #tpu.dot_dimension_numbers<[1], [0], [0], [1], [0, 0, 1, 1], [], []>} : vector<8x32xbf16>, vector<32x128xbf16>, vector<8x128xf32> -> vector<8x128xf32>
    %285 = arith.addf %282, %284 : vector<8x128xf32>
    %286 = vector.extract_strided_slice %285 {offsets = [0, 0], sizes = [8, 96], strides = [1, 1]} : vector<8x128xf32> to vector<8x96xf32>
    %287 = arith.negf %286 : vector<8x96xf32>
    %288 = math.exp %287 : vector<8x96xf32>
    %cst_88 = arith.constant 1.000000e+00 : f32
    %289 = vector.broadcast %cst_88 : f32 to vector<8x96xf32>
    %290 = arith.addf %289, %288 : vector<8x96xf32>
    %291 = arith.divf %289, %290 : vector<8x96xf32>
    %292 = vector.extract_strided_slice %291 {offsets = [0, 0], sizes = [8, 32], strides = [1, 1]} : vector<8x96xf32> to vector<8x32xf32>
    %293 = vector.extract_strided_slice %291 {offsets = [0, 32], sizes = [8, 32], strides = [1, 1]} : vector<8x96xf32> to vector<8x32xf32>
    %294 = vector.extract_strided_slice %291 {offsets = [0, 64], sizes = [8, 32], strides = [1, 1]} : vector<8x96xf32> to vector<8x32xf32>
    %295 = vector.extract_strided_slice %285 {offsets = [0, 96], sizes = [8, 32], strides = [1, 1]} : vector<8x128xf32> to vector<8x32xf32>
    %296 = math.tanh %295 : vector<8x32xf32>
    %297 = arith.mulf %293, %274 : vector<8x32xf32>
    %298 = arith.mulf %292, %296 : vector<8x32xf32>
    %299 = arith.addf %297, %298 : vector<8x32xf32>
    %300 = math.tanh %299 : vector<8x32xf32>
    %301 = arith.mulf %294, %300 : vector<8x32xf32>
    %302 = arith.index_cast %280 : i32 to index
    %c0_89 = arith.constant 0 : index
    %303 = vector.load %arg12[%302, %c0_89] : memref<64x32xf32, #tpu.memory_space<vmem>>, vector<8x32xf32>
    tpu.vector_store %arg12[%302, %c0_89], %301 {strides = array<i32>} : memref<64x32xf32, #tpu.memory_space<vmem>>, vector<8x32xf32>,
    %c3_i32_90 = arith.constant 3 : i32
    %c8_i32_91 = arith.constant 8 : i32
    %304 = arith.muli %c3_i32_90, %c8_i32_91 : i32
    %305 = tpu.assume_multiple %304, 8 : i32
    %306 = arith.index_cast %305 : i32 to index
    %c0_92 = arith.constant 0 : index
    %307 = vector.load %arg11[%306, %c0_92] : memref<64x128xf32, #tpu.memory_space<vmem>>, vector<8x128xf32>
    %308 = arith.truncf %301 : vector<8x32xf32> to vector<8x32xbf16>
    %cst_93 = arith.constant dense<0.000000e+00> : vector<8x128xf32>
    %309 = tpu.matmul %308, %226, %cst_93 {dimension_numbers = #tpu.dot_dimension_numbers<[1], [0], [0], [1], [0, 0, 1, 1], [], []>} : vector<8x32xbf16>, vector<32x128xbf16>, vector<8x128xf32> -> vector<8x128xf32>
    %310 = arith.addf %307, %309 : vector<8x128xf32>
    %311 = vector.extract_strided_slice %310 {offsets = [0, 0], sizes = [8, 96], strides = [1, 1]} : vector<8x128xf32> to vector<8x96xf32>
    %312 = arith.negf %311 : vector<8x96xf32>
    %313 = math.exp %312 : vector<8x96xf32>
    %cst_94 = arith.constant 1.000000e+00 : f32
    %314 = vector.broadcast %cst_94 : f32 to vector<8x96xf32>
    %315 = arith.addf %314, %313 : vector<8x96xf32>
    %316 = arith.divf %314, %315 : vector<8x96xf32>
    %317 = vector.extract_strided_slice %316 {offsets = [0, 0], sizes = [8, 32], strides = [1, 1]} : vector<8x96xf32> to vector<8x32xf32>
    %318 = vector.extract_strided_slice %316 {offsets = [0, 32], sizes = [8, 32], strides = [1, 1]} : vector<8x96xf32> to vector<8x32xf32>
    %319 = vector.extract_strided_slice %316 {offsets = [0, 64], sizes = [8, 32], strides = [1, 1]} : vector<8x96xf32> to vector<8x32xf32>
    %320 = vector.extract_strided_slice %310 {offsets = [0, 96], sizes = [8, 32], strides = [1, 1]} : vector<8x128xf32> to vector<8x32xf32>
    %321 = math.tanh %320 : vector<8x32xf32>
    %322 = arith.mulf %318, %299 : vector<8x32xf32>
    %323 = arith.mulf %317, %321 : vector<8x32xf32>
    %324 = arith.addf %322, %323 : vector<8x32xf32>
    %325 = math.tanh %324 : vector<8x32xf32>
    %326 = arith.mulf %319, %325 : vector<8x32xf32>
    %327 = arith.index_cast %305 : i32 to index
    %c0_95 = arith.constant 0 : index
    %328 = vector.load %arg12[%327, %c0_95] : memref<64x32xf32, #tpu.memory_space<vmem>>, vector<8x32xf32>
    tpu.vector_store %arg12[%327, %c0_95], %326 {strides = array<i32>} : memref<64x32xf32, #tpu.memory_space<vmem>>, vector<8x32xf32>,
    %c4_i32_96 = arith.constant 4 : i32
    %c8_i32_97 = arith.constant 8 : i32
    %329 = arith.muli %c4_i32_96, %c8_i32_97 : i32
    %330 = tpu.assume_multiple %329, 8 : i32
    %331 = arith.index_cast %330 : i32 to index
    %c0_98 = arith.constant 0 : index
    %332 = vector.load %arg11[%331, %c0_98] : memref<64x128xf32, #tpu.memory_space<vmem>>, vector<8x128xf32>
    %333 = arith.truncf %326 : vector<8x32xf32> to vector<8x32xbf16>
    %cst_99 = arith.constant dense<0.000000e+00> : vector<8x128xf32>
    %334 = tpu.matmul %333, %226, %cst_99 {dimension_numbers = #tpu.dot_dimension_numbers<[1], [0], [0], [1], [0, 0, 1, 1], [], []>} : vector<8x32xbf16>, vector<32x128xbf16>, vector<8x128xf32> -> vector<8x128xf32>
    %335 = arith.addf %332, %334 : vector<8x128xf32>
    %336 = vector.extract_strided_slice %335 {offsets = [0, 0], sizes = [8, 96], strides = [1, 1]} : vector<8x128xf32> to vector<8x96xf32>
    %337 = arith.negf %336 : vector<8x96xf32>
    %338 = math.exp %337 : vector<8x96xf32>
    %cst_100 = arith.constant 1.000000e+00 : f32
    %339 = vector.broadcast %cst_100 : f32 to vector<8x96xf32>
    %340 = arith.addf %339, %338 : vector<8x96xf32>
    %341 = arith.divf %339, %340 : vector<8x96xf32>
    %342 = vector.extract_strided_slice %341 {offsets = [0, 0], sizes = [8, 32], strides = [1, 1]} : vector<8x96xf32> to vector<8x32xf32>
    %343 = vector.extract_strided_slice %341 {offsets = [0, 32], sizes = [8, 32], strides = [1, 1]} : vector<8x96xf32> to vector<8x32xf32>
    %344 = vector.extract_strided_slice %341 {offsets = [0, 64], sizes = [8, 32], strides = [1, 1]} : vector<8x96xf32> to vector<8x32xf32>
    %345 = vector.extract_strided_slice %335 {offsets = [0, 96], sizes = [8, 32], strides = [1, 1]} : vector<8x128xf32> to vector<8x32xf32>
    %346 = math.tanh %345 : vector<8x32xf32>
    %347 = arith.mulf %343, %324 : vector<8x32xf32>
    %348 = arith.mulf %342, %346 : vector<8x32xf32>
    %349 = arith.addf %347, %348 : vector<8x32xf32>
    %350 = math.tanh %349 : vector<8x32xf32>
    %351 = arith.mulf %344, %350 : vector<8x32xf32>
    %352 = arith.index_cast %330 : i32 to index
    %c0_101 = arith.constant 0 : index
    %353 = vector.load %arg12[%352, %c0_101] : memref<64x32xf32, #tpu.memory_space<vmem>>, vector<8x32xf32>
    tpu.vector_store %arg12[%352, %c0_101], %351 {strides = array<i32>} : memref<64x32xf32, #tpu.memory_space<vmem>>, vector<8x32xf32>,
    %c5_i32_102 = arith.constant 5 : i32
    %c8_i32_103 = arith.constant 8 : i32
    %354 = arith.muli %c5_i32_102, %c8_i32_103 : i32
    %355 = tpu.assume_multiple %354, 8 : i32
    %356 = arith.index_cast %355 : i32 to index
    %c0_104 = arith.constant 0 : index
    %357 = vector.load %arg11[%356, %c0_104] : memref<64x128xf32, #tpu.memory_space<vmem>>, vector<8x128xf32>
    %358 = arith.truncf %351 : vector<8x32xf32> to vector<8x32xbf16>
    %cst_105 = arith.constant dense<0.000000e+00> : vector<8x128xf32>
    %359 = tpu.matmul %358, %226, %cst_105 {dimension_numbers = #tpu.dot_dimension_numbers<[1], [0], [0], [1], [0, 0, 1, 1], [], []>} : vector<8x32xbf16>, vector<32x128xbf16>, vector<8x128xf32> -> vector<8x128xf32>
    %360 = arith.addf %357, %359 : vector<8x128xf32>
    %361 = vector.extract_strided_slice %360 {offsets = [0, 0], sizes = [8, 96], strides = [1, 1]} : vector<8x128xf32> to vector<8x96xf32>
    %362 = arith.negf %361 : vector<8x96xf32>
    %363 = math.exp %362 : vector<8x96xf32>
    %cst_106 = arith.constant 1.000000e+00 : f32
    %364 = vector.broadcast %cst_106 : f32 to vector<8x96xf32>
    %365 = arith.addf %364, %363 : vector<8x96xf32>
    %366 = arith.divf %364, %365 : vector<8x96xf32>
    %367 = vector.extract_strided_slice %366 {offsets = [0, 0], sizes = [8, 32], strides = [1, 1]} : vector<8x96xf32> to vector<8x32xf32>
    %368 = vector.extract_strided_slice %366 {offsets = [0, 32], sizes = [8, 32], strides = [1, 1]} : vector<8x96xf32> to vector<8x32xf32>
    %369 = vector.extract_strided_slice %366 {offsets = [0, 64], sizes = [8, 32], strides = [1, 1]} : vector<8x96xf32> to vector<8x32xf32>
    %370 = vector.extract_strided_slice %360 {offsets = [0, 96], sizes = [8, 32], strides = [1, 1]} : vector<8x128xf32> to vector<8x32xf32>
    %371 = math.tanh %370 : vector<8x32xf32>
    %372 = arith.mulf %368, %349 : vector<8x32xf32>
    %373 = arith.mulf %367, %371 : vector<8x32xf32>
    %374 = arith.addf %372, %373 : vector<8x32xf32>
    %375 = math.tanh %374 : vector<8x32xf32>
    %376 = arith.mulf %369, %375 : vector<8x32xf32>
    %377 = arith.index_cast %355 : i32 to index
    %c0_107 = arith.constant 0 : index
    %378 = vector.load %arg12[%377, %c0_107] : memref<64x32xf32, #tpu.memory_space<vmem>>, vector<8x32xf32>
    tpu.vector_store %arg12[%377, %c0_107], %376 {strides = array<i32>} : memref<64x32xf32, #tpu.memory_space<vmem>>, vector<8x32xf32>,
    %c6_i32_108 = arith.constant 6 : i32
    %c8_i32_109 = arith.constant 8 : i32
    %379 = arith.muli %c6_i32_108, %c8_i32_109 : i32
    %380 = tpu.assume_multiple %379, 8 : i32
    %381 = arith.index_cast %380 : i32 to index
    %c0_110 = arith.constant 0 : index
    %382 = vector.load %arg11[%381, %c0_110] : memref<64x128xf32, #tpu.memory_space<vmem>>, vector<8x128xf32>
    %383 = arith.truncf %376 : vector<8x32xf32> to vector<8x32xbf16>
    %cst_111 = arith.constant dense<0.000000e+00> : vector<8x128xf32>
    %384 = tpu.matmul %383, %226, %cst_111 {dimension_numbers = #tpu.dot_dimension_numbers<[1], [0], [0], [1], [0, 0, 1, 1], [], []>} : vector<8x32xbf16>, vector<32x128xbf16>, vector<8x128xf32> -> vector<8x128xf32>
    %385 = arith.addf %382, %384 : vector<8x128xf32>
    %386 = vector.extract_strided_slice %385 {offsets = [0, 0], sizes = [8, 96], strides = [1, 1]} : vector<8x128xf32> to vector<8x96xf32>
    %387 = arith.negf %386 : vector<8x96xf32>
    %388 = math.exp %387 : vector<8x96xf32>
    %cst_112 = arith.constant 1.000000e+00 : f32
    %389 = vector.broadcast %cst_112 : f32 to vector<8x96xf32>
    %390 = arith.addf %389, %388 : vector<8x96xf32>
    %391 = arith.divf %389, %390 : vector<8x96xf32>
    %392 = vector.extract_strided_slice %391 {offsets = [0, 0], sizes = [8, 32], strides = [1, 1]} : vector<8x96xf32> to vector<8x32xf32>
    %393 = vector.extract_strided_slice %391 {offsets = [0, 32], sizes = [8, 32], strides = [1, 1]} : vector<8x96xf32> to vector<8x32xf32>
    %394 = vector.extract_strided_slice %391 {offsets = [0, 64], sizes = [8, 32], strides = [1, 1]} : vector<8x96xf32> to vector<8x32xf32>
    %395 = vector.extract_strided_slice %385 {offsets = [0, 96], sizes = [8, 32], strides = [1, 1]} : vector<8x128xf32> to vector<8x32xf32>
    %396 = math.tanh %395 : vector<8x32xf32>
    %397 = arith.mulf %393, %374 : vector<8x32xf32>
    %398 = arith.mulf %392, %396 : vector<8x32xf32>
    %399 = arith.addf %397, %398 : vector<8x32xf32>
    %400 = math.tanh %399 : vector<8x32xf32>
    %401 = arith.mulf %394, %400 : vector<8x32xf32>
    %402 = arith.index_cast %380 : i32 to index
    %c0_113 = arith.constant 0 : index
    %403 = vector.load %arg12[%402, %c0_113] : memref<64x32xf32, #tpu.memory_space<vmem>>, vector<8x32xf32>
    tpu.vector_store %arg12[%402, %c0_113], %401 {strides = array<i32>} : memref<64x32xf32, #tpu.memory_space<vmem>>, vector<8x32xf32>,
    %c7_i32_114 = arith.constant 7 : i32
    %c8_i32_115 = arith.constant 8 : i32
    %404 = arith.muli %c7_i32_114, %c8_i32_115 : i32
    %405 = tpu.assume_multiple %404, 8 : i32
    %406 = arith.index_cast %405 : i32 to index
    %c0_116 = arith.constant 0 : index
    %407 = vector.load %arg11[%406, %c0_116] : memref<64x128xf32, #tpu.memory_space<vmem>>, vector<8x128xf32>
    %408 = arith.truncf %401 : vector<8x32xf32> to vector<8x32xbf16>
    %cst_117 = arith.constant dense<0.000000e+00> : vector<8x128xf32>
    %409 = tpu.matmul %408, %226, %cst_117 {dimension_numbers = #tpu.dot_dimension_numbers<[1], [0], [0], [1], [0, 0, 1, 1], [], []>} : vector<8x32xbf16>, vector<32x128xbf16>, vector<8x128xf32> -> vector<8x128xf32>
    %410 = arith.addf %407, %409 : vector<8x128xf32>
    %411 = vector.extract_strided_slice %410 {offsets = [0, 0], sizes = [8, 96], strides = [1, 1]} : vector<8x128xf32> to vector<8x96xf32>
    %412 = arith.negf %411 : vector<8x96xf32>
    %413 = math.exp %412 : vector<8x96xf32>
    %cst_118 = arith.constant 1.000000e+00 : f32
    %414 = vector.broadcast %cst_118 : f32 to vector<8x96xf32>
    %415 = arith.addf %414, %413 : vector<8x96xf32>
    %416 = arith.divf %414, %415 : vector<8x96xf32>
    %417 = vector.extract_strided_slice %416 {offsets = [0, 0], sizes = [8, 32], strides = [1, 1]} : vector<8x96xf32> to vector<8x32xf32>
    %418 = vector.extract_strided_slice %416 {offsets = [0, 32], sizes = [8, 32], strides = [1, 1]} : vector<8x96xf32> to vector<8x32xf32>
    %419 = vector.extract_strided_slice %416 {offsets = [0, 64], sizes = [8, 32], strides = [1, 1]} : vector<8x96xf32> to vector<8x32xf32>
    %420 = vector.extract_strided_slice %410 {offsets = [0, 96], sizes = [8, 32], strides = [1, 1]} : vector<8x128xf32> to vector<8x32xf32>
    %421 = math.tanh %420 : vector<8x32xf32>
    %422 = arith.mulf %418, %399 : vector<8x32xf32>
    %423 = arith.mulf %417, %421 : vector<8x32xf32>
    %424 = arith.addf %422, %423 : vector<8x32xf32>
    %425 = math.tanh %424 : vector<8x32xf32>
    %426 = arith.mulf %419, %425 : vector<8x32xf32>
    %427 = arith.index_cast %405 : i32 to index
    %c0_119 = arith.constant 0 : index
    %428 = vector.load %arg12[%427, %c0_119] : memref<64x32xf32, #tpu.memory_space<vmem>>, vector<8x32xf32>
    tpu.vector_store %arg12[%427, %c0_119], %426 {strides = array<i32>} : memref<64x32xf32, #tpu.memory_space<vmem>>, vector<8x32xf32>,
    %c8_i32_120 = arith.constant 8 : i32
    %c1 = arith.constant 1 : index
    %c0_121 = arith.constant 0 : index
    %c0_122 = arith.constant 0 : index
    %429 = vector.load %arg9[%c1, %c0_121, %c0_122] : memref<2x8x32xf32, #tpu.memory_space<vmem>>, vector<1x8x32xf32>
    %430 = vector.shape_cast %429 : vector<1x8x32xf32> to vector<8x32xf32>
    %431 = vector.shape_cast %426 : vector<8x32xf32> to vector<1x8x32xf32>
    tpu.vector_store %arg9[%c1, %c0_121, %c0_122], %431 {strides = array<i32>} : memref<2x8x32xf32, #tpu.memory_space<vmem>>, vector<1x8x32xf32>,
    %c1_123 = arith.constant 1 : index
    %c0_124 = arith.constant 0 : index
    %c0_125 = arith.constant 0 : index
    %432 = vector.load %arg10[%c1_123, %c0_124, %c0_125] : memref<2x8x32xf32, #tpu.memory_space<vmem>>, vector<1x8x32xf32>
    %433 = vector.shape_cast %432 : vector<1x8x32xf32> to vector<8x32xf32>
    %434 = vector.shape_cast %424 : vector<8x32xf32> to vector<1x8x32xf32>
    tpu.vector_store %arg10[%c1_123, %c0_124, %c0_125], %434 {strides = array<i32>} : memref<2x8x32xf32, #tpu.memory_space<vmem>>, vector<1x8x32xf32>,
    %c0_126 = arith.constant 0 : index
    %c0_127 = arith.constant 0 : index
    %435 = vector.load %arg12[%c0_126, %c0_127] : memref<64x32xf32, #tpu.memory_space<vmem>>, vector<64x32xf32>
    %c0_128 = arith.constant 0 : index
    %c0_129 = arith.constant 0 : index
    %436 = vector.load %arg8[%c0_128, %c0_129] : memref<64x32xf32, #tpu.memory_space<vmem>>, vector<64x32xf32>
    tpu.vector_store %arg8[%c0_128, %c0_129], %435 {strides = array<i32>} : memref<64x32xf32, #tpu.memory_space<vmem>>, vector<64x32xf32>,
    return
  }
  func.func @transform_0(%arg0: i32) -> (i32, i32) {
    %c0_i32 = arith.constant 0 : i32
    %c0_i32_0 = arith.constant 0 : i32
    %c0_i32_1 = arith.constant 0 : i32
    return %c0_i32, %c0_i32_0 : i32, i32
  }
  func.func @transform_1(%arg0: i32) -> (i32, i32) {
    %c0_i32 = arith.constant 0 : i32
    %c0_i32_0 = arith.constant 0 : i32
    %c0_i32_1 = arith.constant 0 : i32
    return %c0_i32, %c0_i32_0 : i32, i32
  }
  func.func @transform_2(%arg0: i32) -> (i32, i32, i32) {
    %c0_i32 = arith.constant 0 : i32
    %c0_i32_0 = arith.constant 0 : i32
    %c0_i32_1 = arith.constant 0 : i32
    %c0_i32_2 = arith.constant 0 : i32
    return %c0_i32, %c0_i32_0, %c0_i32_1 : i32, i32, i32
  }
  func.func @transform_3(%arg0: i32) -> (i32, i32) {
    %c0_i32 = arith.constant 0 : i32
    %c0_i32_0 = arith.constant 0 : i32
    %c0_i32_1 = arith.constant 0 : i32
    return %c0_i32, %c0_i32_0 : i32, i32
  }
  func.func @transform_4(%arg0: i32) -> (i32, i32) {
    %c0_i32 = arith.constant 0 : i32
    %c0_i32_0 = arith.constant 0 : i32
    %c0_i32_1 = arith.constant 0 : i32
    return %c0_i32, %c0_i32_0 : i32, i32
  }
  func.func @transform_5(%arg0: i32) -> (i32, i32, i32) {
    %c0_i32 = arith.constant 0 : i32
    %c0_i32_0 = arith.constant 0 : i32
    %c0_i32_1 = arith.constant 0 : i32
    %c0_i32_2 = arith.constant 0 : i32
    return %c0_i32, %c0_i32_0, %c0_i32_1 : i32, i32, i32
  }
  func.func @transform_6(%arg0: i32) -> (i32, i32) {
    %c0_i32 = arith.constant 0 : i32
    %c0_i32_0 = arith.constant 0 : i32
    %c0_i32_1 = arith.constant 0 : i32
    return %c0_i32, %c0_i32_0 : i32, i32
  }
  func.func @transform_7(%arg0: i32) -> (i32, i32) {
    %c0_i32 = arith.constant 0 : i32
    %c0_i32_0 = arith.constant 0 : i32
    %c0_i32_1 = arith.constant 0 : i32
    return %c0_i32, %c0_i32_0 : i32, i32
  }
  func.func @transform_8(%arg0: i32) -> (i32, i32, i32) {
    %c0_i32 = arith.constant 0 : i32
    %c0_i32_0 = arith.constant 0 : i32
    %c0_i32_1 = arith.constant 0 : i32
    %c0_i32_2 = arith.constant 0 : i32
    return %c0_i32, %c0_i32_0, %c0_i32_1 : i32, i32, i32
  }
  func.func @transform_9(%arg0: i32) -> (i32, i32, i32) {
    %c0_i32 = arith.constant 0 : i32
    %c0_i32_0 = arith.constant 0 : i32
    %c0_i32_1 = arith.constant 0 : i32
    %c0_i32_2 = arith.constant 0 : i32
    return %c0_i32, %c0_i32_0, %c0_i32_1 : i32, i32, i32
  }
}

</mosaic_0001>

<bundles_post_ra>
// kernel: conv_lstm_forward.1
= control target key start
LH: loop header
LB: loop body
LE: loop exit
PB: predicated region body
PF: predicated region fallthrough
CT: control target
= control target key end

     0   :  { %15 = vsyncpa [#allocation5], 0  ;;  %v2084_v1 = vmov 0.0   ;;  %vm75_vm0 = vcmask 130048   ;;  %vm2085_vm1 = vmmov 0   ;;  %s2578_s0 = inlined_call_operand.vmem [shape: bf16[64,16], index: 0, kind: input, shape index: {}]   ;;  %s2579_s1 = inlined_call_operand.vmem [shape: bf16[16,128], index: 1, kind: input, shape index: {}]   ;;  %s2580_s2 = inlined_call_operand.vmem [shape: bf16[1,32,128], index: 2, kind: input, shape index: {}]   ;;  %s2581_s3 = inlined_call_operand.vmem [shape: f32[1,128], index: 3, kind: input, shape index: {}]   ;;  %s2582_s4 = inlined_call_operand.vmem [shape: bf16[32,128], index: 4, kind: input, shape index: {}]   ;;  %s2583_s5 = inlined_call_operand.vmem [shape: bf16[1,32,128], index: 5, kind: input, shape index: {}]   ;;  %s2584_s6 = inlined_call_operand.vmem [shape: f32[1,128], index: 6, kind: input, shape index: {}]   ;;  %s2585_s7 = inlined_call_operand.vmem [shape: f32[64,32], index: 7, kind: output, shape index: {0}]   ;;  %s2586_s8 = inlined_call_operand.hbm [shape: f32[2,8,32], index: 8, kind: output, shape index: {1}]   ;;  %s2587_s9 = inlined_call_operand.hbm [shape: f32[2,8,32], index: 9, kind: output, shape index: {2}]  }
   0x1   :  { %v1901_v0 = vld [vmem:[%s2579_s1] sm:$0xff]   ;;  %1751 = vmatprep.subr.bf16.mxu1 %v2084_v1  ;;  %v2151_v2 = vld [vmem:[%s2580_s2 + $0x8] sm:$0xff]   ;;  %1755 = vmatprep.mubr.msk.bf16.mxu1 %vm2085_vm1, %v2084_v1 }
   0x2   :  { %1741 = vmatprep.subr.bf16.mxu0 %v1901_v0  ;;  %v1903_v3 = vld [vmem:[%s2578_s0] sm:$0xff]   ;;  %1752 = vmatpush3.bf16.msra.mxu1 %v2151_v2  ;;  %v1904_v4 = vld [vmem:[%s2578_s0 + $0x8] sm:$0xff]  }
   0x3   :  { %1742 = vmatpush3.bf16.msra.mxu0 %v1901_v0  ;;  %1743 = vmatprep.mubr.msk.bf16.mxu0 %vm75_vm0, %v1903_v3  ;;  %v2165_v5 = vld [vmem:[%s2580_s2] sm:$0xff]  }
   0x4   :  { %1753 = vmatprep.subr.bf16.mxu1 %v2084_v1  ;;  %1767 = vmatprep.subr.bf16.mxu0 %v2084_v1 }
   0x6   :  { %1744 = vmatmul.mubr.msk.bf16.vlgmr.msra.gmra.mxu0 %vm75_vm0, %v1904_v4  ;;  %1754 = vmatpush3.bf16.msra.mxu1 %v2165_v5 }
   0x7   :  { %1768 = vmatpush3.bf16.msra.mxu0 %v2151_v2  ;;  %1759 = vmatprep.subr.bf16.mxu1 %v2084_v1 }
   0x8   :  { %1769 = vmatprep.subr.bf16.mxu0 %v2084_v1 }
   0x9   :  { %16 = vsyncpa [#allocation7], 0  ;;  %v2086_v6 = vmov 0   ;;  %v2189_v8 = vld [vmem:[%s2581_s3] ss:$0 sm:$0xff]  ;;  %s2087_s19 = smov 32  }
   0xa   :  { %1756 = vmatmul.mubr.bf16.vlgmr.msra.gmra.mxu1 %v2086_v6  ;;  %s2088_s3 = smov 64   ;;  %vm178_vm2 = vcmask 261120   ;;  %v1906_v49 = vld [vmem:[%s2578_s0 + $0x10] sm:$0xff]   ;;  %v1907_v50 = vld [vmem:[%s2578_s0 + $0x18] sm:$0xff]   ;;  %s2090_s21 = smov [#allocation4]  }
   0xb   :  { %1760 = vmatpush3.bf16.msra.mxu1 %v2151_v2  ;;  %1763 = vmatprep.mubr.msk.bf16.mxu1 %vm2085_vm1, %v2084_v1  ;;  %s1602_s22 = sshll.u32 %s2090_s21, 4  ;;  %s2091_s23 = smov [#allocation6]   ;;  %s1603_s22 = int_to_ptr.vmem [resolvable:$true] %s1602_s22 }
   0xc   :  { %1761 = vmatprep.subr.bf16.mxu1 %v2084_v1  ;;  %1770 = vmatpush3.bf16.msra.mxu0 %v2165_v5  ;;  %s1614_s0 = sshll.u32 %s2091_s23, 4  ;;  %s2040_s24 = scalar_lea.vmem %s1603_s22, 256  ;;  %s1615_s0 = int_to_ptr.vmem [resolvable:$true] %s1614_s0 }
   0xd   :  { %1783 = vmatprep.subr.bf16.mxu0 %v2084_v1  ;;  %1747 = vmatprep.mubr.msk.bf16.mxu0 %vm75_vm0, %v1906_v49  ;;  %p2041_p0 = scmp.ne.s32.totalorder %s1603_s22, %s2040_s24  ;;  %p2045_p1 = scmp.lt.s32.totalorder %s1603_s22, %s1603_s22 }
   0xe   :  { %1748 = vmatmul.mubr.msk.bf16.gmra.mxu0 %vm75_vm0, %v1907_v50  ;;  %p2046_p2 = scmp.lt.s32.totalorder %s2040_s24, %s2040_s24 }
   0xf   :  { %1762 = vmatpush3.bf16.msra.mxu1 %v2165_v5  ;;  %1771 = vmatprep.mubr.msk.bf16.mxu0 %vm2085_vm1, %v2084_v1 }
  0x10   :  { %1775 = vmatprep.subr.bf16.mxu1 %v2084_v1  ;;  %p2047_p3 = por %p2046_p2, %p2045_p1 }
  0x12   :  { %p2048_p4 = pnand %p2047_p3, %p2041_p0 }
  0xc6   :  { %v2184_v7 = vpop.f32.mrf.mxu0 }
  0xc7   :  { %v131_v60 = vadd.f32 %v2184_v7, %v2189_v8 }
  0xc8   :  { %v122_v9 = vpop.f32.mrf.mxu0 }
  0xc9   :  { %v123_v10 = vadd.f32 %v2189_v8, %v122_v9 }
  0xca   :  { %v216_v11 = vpop.f32.mrf.mxu1  ;;  %v2207_v31 = vpop.f32.mrf.mxu0 }
  0xcb   :  { %v222_v12 = vadd.f32 %v216_v11, %v123_v10 }
  0xcc   :  { %v1757_v13 = vpop.f32.mrf.mxu1  ;;  %v125_v32 = vpop.f32.mrf.mxu0 }
  0xcd   :  { %1912 = vtanh.f32 %v222_v12  ;;  %v1643_v17 = vmul.f32 -1.442695, %v222_v12  ;;  %v126_v33 = vadd.f32 %v2189_v8, %v125_v32 }
  0xce   :  { %v219_v14 = vpop.f32.mrf.mxu1  ;;  %v2235_v56 = vpop.f32.mrf.mxu0 }
  0xcf   :  { %1914 = vpow2.f32 %v1643_v17 }
  0xd0   :  { %v1758_v15 = vpop.f32.mrf.mxu1  ;;  %v2237_v57 = vpop.f32.mrf.mxu0 }
  0xd2   :  { %v2239_v58 = vpop.f32.mrf.mxu0 }
  0xd4   :  { %v2241_v59 = vpop.f32.mrf.mxu0 }
  0xda   :  { %v1913_v16 = vpop.eup %1912 }
  0xdb   :  { %232 = vrot.lane.b32.xlu0 %v1913_v16, %s2087_s19 }
  0xdc   :  { %v1915_v18 = vpop.eup %1914 }
  0xdd   :  { %v226_v19 = vadd.f32 1.0, %v1915_v18 }
  0xdf   :  { %1916 = vrcp.f32 %v226_v19 }
  0xec   :  { %v1917_v20 = vpop.eup %1916 }
  0xed   :  { %v230_v23 = vmul.f32 0.0, %v1917_v20 }
 0x14d   :  { %v233_v21 = vpop.permute.xlu0 %232 }
 0x14e   :  { %v235_v22 = vmul.f32 %v1917_v20, %v233_v21 }
 0x150   :  { %237 = vrot.lane.b32.xlu0 %v235_v22, %s2087_s19  ;;  %v134_v22 = vadd.f32 %v2207_v31, %v2189_v8 }
 0x1c2   :  { %v238_v24 = vpop.permute.xlu0 %237 }
 0x1c3   :  { %v240_v25 = vadd.f32 %v238_v24, %v230_v23 }
 0x1c5   :  { %1918 = vtanh.f32 %v240_v25 }
 0x1d2   :  { %v1919_v26 = vpop.eup %1918 }
 0x1d3   :  { %243 = vrot.lane.b32.xlu1 %v1919_v26, %s2087_s19 }
 0x245   :  { %v244_v27 = vpop.permute.xlu1 %243 }
 0x246   :  { %v2195_v28 = vmul.f32 %v1917_v20, %v244_v27 }
 0x248   :  { %v254_v29 = vpack.c.bf16 %v2195_v28, %v2195_v28 }
 0x24a   :  { %256 = vrot.lane.b32.xlu1 %v254_v29, %s2088_s3 }
 0x2bc   :  { %v257_v30 = vpop.permute.xlu1 %256 }
 0x2bd   :  { %1764 = vmatmul.mubr.msk.bf16.vlgmr.msra.gmra.mxu1 %vm178_vm2, %v257_v30 }
 0x2be   :  { %1776 = vmatpush3.bf16.msra.mxu1 %v2151_v2  ;;  %1779 = vmatprep.mubr.msk.bf16.mxu1 %vm2085_vm1, %v2084_v1 }
 0x2bf   :  { %1777 = vmatprep.subr.bf16.mxu1 %v2084_v1 }
 0x2c2   :  { %1778 = vmatpush3.bf16.msra.mxu1 %v2165_v5 }
 0x2c3   :  { %1791 = vmatprep.subr.bf16.mxu1 %v2084_v1 }
 0x37d   :  { %v295_v34 = vpop.f32.mrf.mxu1 }
 0x37e   :  { %v301_v35 = vadd.f32 %v295_v34, %v126_v33 }
 0x37f   :  { %v1765_v36 = vpop.f32.mrf.mxu1 }
 0x380   :  { %1920 = vtanh.f32 %v301_v35  ;;  %v1645_v40 = vmul.f32 -1.442695, %v301_v35 }
 0x381   :  { %v298_v37 = vpop.f32.mrf.mxu1 }
 0x382   :  { %1922 = vpow2.f32 %v1645_v40 }
 0x383   :  { %v1766_v38 = vpop.f32.mrf.mxu1 }
 0x38d   :  { %v1921_v39 = vpop.eup %1920 }
 0x38e   :  { %311 = vrot.lane.b32.xlu0 %v1921_v39, %s2087_s19 }
 0x38f   :  { %v1923_v41 = vpop.eup %1922 }
 0x390   :  { %v305_v42 = vadd.f32 1.0, %v1923_v41 }
 0x392   :  { %1924 = vrcp.f32 %v305_v42 }
 0x39f   :  { %v1925_v43 = vpop.eup %1924 }
 0x3a0   :  { %v309_v46 = vmul.f32 %v1925_v43, %v240_v25 }
 0x400   :  { %v312_v44 = vpop.permute.xlu0 %311 }
 0x401   :  { %v314_v45 = vmul.f32 %v1925_v43, %v312_v44  ;;  %v139_v44 = vadd.f32 %v2189_v8, %v2237_v57 }
 0x403   :  { %316 = vrot.lane.b32.xlu1 %v314_v45, %s2087_s19 }
 0x475   :  { %v317_v47 = vpop.permute.xlu1 %316 }
 0x476   :  { %v319_v48 = vadd.f32 %v317_v47, %v309_v46 }
 0x478   :  { %1926 = vtanh.f32 %v319_v48 }
 0x485   :  { %v1927_v51 = vpop.eup %1926 }
 0x486   :  { %322 = vrot.lane.b32.xlu0 %v1927_v51, %s2087_s19 }
 0x4f8   :  { %v323_v52 = vpop.permute.xlu0 %322 }
 0x4f9   :  { %v2223_v53 = vmul.f32 %v1925_v43, %v323_v52 }
 0x4fb   :  { %v334_v54 = vpack.c.bf16 %v2223_v53, %v2223_v53 }
 0x4fd   :  { %336 = vrot.lane.b32.xlu1 %v334_v54, %s2088_s3 }
 0x56f   :  { %v337_v55 = vpop.permute.xlu1 %336 }
 0x570   :  { %1772 = vmatmul.mubr.msk.bf16.vlgmr.msra.gmra.mxu0 %vm178_vm2, %v337_v55 }
 0x571   :  { %1784 = vmatpush3.bf16.msra.mxu0 %v2151_v2  ;;  %1787 = vmatprep.mubr.msk.bf16.mxu0 %vm2085_vm1, %v2084_v1 }
 0x572   :  { %1785 = vmatprep.subr.bf16.mxu0 %v2084_v1 }
 0x575   :  { %1786 = vmatpush3.bf16.msra.mxu0 %v2165_v5 }
 0x576   :  { %1799 = vmatprep.subr.bf16.mxu0 %v2084_v1 }
 0x630   :  { %v375_v61 = vpop.f32.mrf.mxu0 }
 0x631   :  { %v381_v62 = vadd.f32 %v375_v61, %v131_v60 }
 0x632   :  { %v1773_v63 = vpop.f32.mrf.mxu0 }
 0x633   :  { %1928 = vtanh.f32 %v381_v62  ;;  %v1647_v9 = vmul.f32 -1.442695, %v381_v62 }
 0x634   :  { %v378_v0 = vpop.f32.mrf.mxu0 }
 0x635   :  { %1930 = vpow2.f32 %v1647_v9 }
 0x636   :  { %v1774_v3 = vpop.f32.mrf.mxu0 }
 0x640   :  { %v1929_v4 = vpop.eup %1928 }
 0x641   :  { %391 = vrot.lane.b32.xlu0 %v1929_v4, %s2087_s19 }
 0x642   :  { %v1931_v10 = vpop.eup %1930 }
 0x643   :  { %v385_v11 = vadd.f32 1.0, %v1931_v10 }
 0x645   :  { %1932 = vrcp.f32 %v385_v11  ;;  %v142_v11 = vadd.f32 %v2189_v8, %v2241_v59 }
 0x652   :  { %v1933_v12 = vpop.eup %1932 }
 0x653   :  { %v389_v7 = vmul.f32 %v1933_v12, %v319_v48 }
 0x6b3   :  { %v392_v13 = vpop.permute.xlu0 %391 }
 0x6b4   :  { %v394_v14 = vmul.f32 %v1933_v12, %v392_v13 }
 0x6b6   :  { %396 = vrot.lane.b32.xlu1 %v394_v14, %s2087_s19 }
 0x728   :  { %v397_v15 = vpop.permute.xlu1 %396 }
 0x729   :  { %v399_v16 = vadd.f32 %v397_v15, %v389_v7 }
 0x72b   :  { %1934 = vtanh.f32 %v399_v16 }
 0x738   :  { %v1935_v17 = vpop.eup %1934 }
 0x739   :  { %402 = vrot.lane.b32.xlu0 %v1935_v17, %s2087_s19 }
 0x7ab   :  { %v403_v18 = vpop.permute.xlu0 %402 }
 0x7ac   :  { %v2248_v19 = vmul.f32 %v1933_v12, %v403_v18 }
 0x7ae   :  { %v414_v20 = vpack.c.bf16 %v2248_v19, %v2248_v19 }
 0x7b0   :  { %416 = vrot.lane.b32.xlu1 %v414_v20, %s2088_s3 }
 0x822   :  { %v417_v21 = vpop.permute.xlu1 %416 }
 0x823   :  { %1780 = vmatmul.mubr.msk.bf16.vlgmr.msra.gmra.mxu1 %vm178_vm2, %v417_v21 }
 0x824   :  { %1792 = vmatpush3.bf16.msra.mxu1 %v2151_v2  ;;  %1795 = vmatprep.mubr.msk.bf16.mxu1 %vm2085_vm1, %v2084_v1 }
 0x825   :  { %1793 = vmatprep.subr.bf16.mxu1 %v2084_v1 }
 0x828   :  { %1794 = vmatpush3.bf16.msra.mxu1 %v2165_v5 }
 0x829   :  { %1807 = vmatprep.subr.bf16.mxu1 %v2084_v1 }
 0x8e3   :  { %v455_v23 = vpop.f32.mrf.mxu1 }
 0x8e4   :  { %v461_v24 = vadd.f32 %v455_v23, %v134_v22 }
 0x8e5   :  { %v1781_v25 = vpop.f32.mrf.mxu1 }
 0x8e6   :  { %1936 = vtanh.f32 %v461_v24  ;;  %v1649_v30 = vmul.f32 -1.442695, %v461_v24 }
 0x8e7   :  { %v458_v26 = vpop.f32.mrf.mxu1 }
 0x8e8   :  { %1938 = vpow2.f32 %v1649_v30  ;;  %v147_v30 = vadd.f32 %v2235_v56, %v2189_v8 }
 0x8e9   :  { %v1782_v27 = vpop.f32.mrf.mxu1 }
 0x8f3   :  { %v1937_v29 = vpop.eup %1936 }
 0x8f4   :  { %471 = vrot.lane.b32.xlu0 %v1937_v29, %s2087_s19 }
 0x8f5   :  { %v1939_v32 = vpop.eup %1938 }
 0x8f6   :  { %v465_v33 = vadd.f32 1.0, %v1939_v32 }
 0x8f8   :  { %1940 = vrcp.f32 %v465_v33 }
 0x905   :  { %v1941_v34 = vpop.eup %1940 }
 0x906   :  { %v469_v31 = vmul.f32 %v1941_v34, %v399_v16 }
 0x966   :  { %v472_v35 = vpop.permute.xlu0 %471 }
 0x967   :  { %v474_v36 = vmul.f32 %v1941_v34, %v472_v35 }
 0x969   :  { %476 = vrot.lane.b32.xlu1 %v474_v36, %s2087_s19 }
 0x9db   :  { %v477_v37 = vpop.permute.xlu1 %476 }
 0x9dc   :  { %v479_v38 = vadd.f32 %v477_v37, %v469_v31 }
 0x9de   :  { %1942 = vtanh.f32 %v479_v38 }
 0x9eb   :  { %v1943_v39 = vpop.eup %1942 }
 0x9ec   :  { %482 = vrot.lane.b32.xlu0 %v1943_v39, %s2087_s19 }
 0xa5e   :  { %v483_v40 = vpop.permute.xlu0 %482 }
 0xa5f   :  { %v2265_v41 = vmul.f32 %v1941_v34, %v483_v40 }
 0xa61   :  { %v494_v42 = vpack.c.bf16 %v2265_v41, %v2265_v41 }
 0xa63   :  { %496 = vrot.lane.b32.xlu1 %v494_v42, %s2088_s3 }
 0xad5   :  { %v497_v43 = vpop.permute.xlu1 %496 }
 0xad6   :  { %1788 = vmatmul.mubr.msk.bf16.vlgmr.msra.gmra.mxu0 %vm178_vm2, %v497_v43 }
 0xad7   :  { %1800 = vmatpush3.bf16.msra.mxu0 %v2151_v2  ;;  %1803 = vmatprep.mubr.msk.bf16.mxu0 %vm2085_vm1, %v2084_v1 }
 0xad8   :  { %1801 = vmatprep.subr.bf16.mxu0 %v2084_v1 }
 0xadb   :  { %1802 = vmatpush3.bf16.msra.mxu0 %v2165_v5 }
 0xb96   :  { %v535_v45 = vpop.f32.mrf.mxu0 }
 0xb97   :  { %v541_v46 = vadd.f32 %v535_v45, %v139_v44 }
 0xb98   :  { %v1789_v47 = vpop.f32.mrf.mxu0 }
 0xb99   :  { %1944 = vtanh.f32 %v541_v46  ;;  %v1651_v51 = vmul.f32 -1.442695, %v541_v46 }
 0xb9a   :  { %v538_v48 = vpop.f32.mrf.mxu0 }
 0xb9b   :  { %1946 = vpow2.f32 %v1651_v51  ;;  %v1908_v48 = vld [vmem:[%s2582_s4 + $0x8] sm:$0xff]  }
 0xb9c   :  { %v1790_v49 = vpop.f32.mrf.mxu0  ;;  %1815 = vmatprep.subr.bf16.mxu0 %v1908_v48 }
 0xba6   :  { %v1945_v50 = vpop.eup %1944 }
 0xba7   :  { %551 = vrot.lane.b32.xlu0 %v1945_v50, %s2087_s19 }
 0xba8   :  { %v1947_v52 = vpop.eup %1946 }
 0xba9   :  { %v545_v54 = vadd.f32 1.0, %v1947_v52 }
 0xbab   :  { %1948 = vrcp.f32 %v545_v54 }
 0xbb8   :  { %v1949_v55 = vpop.eup %1948 }
 0xbb9   :  { %v549_v57 = vmul.f32 %v1949_v55, %v479_v38 }
 0xc19   :  { %v552_v60 = vpop.permute.xlu0 %551 }
 0xc1a   :  { %v554_v61 = vmul.f32 %v1949_v55, %v552_v60 }
 0xc1c   :  { %556 = vrot.lane.b32.xlu1 %v554_v61, %s2087_s19 }
 0xc8e   :  { %v557_v62 = vpop.permute.xlu1 %556 }
 0xc8f   :  { %v559_v63 = vadd.f32 %v557_v62, %v549_v57  ;;  %v2340_v62 = vld [vmem:[%s2583_s5 + $0x8] sm:$0xff]  }
 0xc91   :  { %1950 = vtanh.f32 %v559_v63 }
 0xc9e   :  { %v1951_v0 = vpop.eup %1950 }
 0xc9f   :  { %562 = vrot.lane.b32.xlu0 %v1951_v0, %s2087_s19 }
 0xd11   :  { %v563_v3 = vpop.permute.xlu0 %562 }
 0xd12   :  { %v2281_v4 = vmul.f32 %v1949_v55, %v563_v3  ;;  %v150_v3 = vadd.f32 %v2239_v58, %v2189_v8 }
 0xd14   :  { %v574_v9 = vpack.c.bf16 %v2281_v4, %v2281_v4 }
 0xd16   :  { %576 = vrot.lane.b32.xlu1 %v574_v9, %s2088_s3 }
 0xd88   :  { %v577_v10 = vpop.permute.xlu1 %576 }
 0xd89   :  { %1796 = vmatmul.mubr.msk.bf16.vlgmr.msra.gmra.mxu1 %vm178_vm2, %v577_v10 }
 0xd8a   :  { %1808 = vmatpush3.bf16.msra.mxu1 %v2151_v2  ;;  %1811 = vmatprep.mubr.msk.bf16.mxu1 %vm2085_vm1, %v2084_v1 }
 0xd8b   :  { %1809 = vmatprep.subr.bf16.mxu1 %v2084_v1 }
 0xd8e   :  { %1810 = vmatpush3.bf16.msra.mxu1 %v2165_v5 }
 0xd8f   :  { %1827 = vmatprep.subr.bf16.mxu1 %v2084_v1 }
 0xe49   :  { %v615_v12 = vpop.f32.mrf.mxu1 }
 0xe4a   :  { %v621_v13 = vadd.f32 %v615_v12, %v142_v11 }
 0xe4b   :  { %v1797_v14 = vpop.f32.mrf.mxu1 }
 0xe4c   :  { %1952 = vtanh.f32 %v621_v13  ;;  %v1653_v2 = vmul.f32 -1.442695, %v621_v13  ;;  %v2373_v14 = vld [vmem:[%s2584_s6] ss:$0 sm:$0xff]  ;;  %s2089_s6 = smov 96  }
 0xe4d   :  { %v618_v7 = vpop.f32.mrf.mxu1 }
 0xe4e   :  { %1954 = vpow2.f32 %v1653_v2 }
 0xe4f   :  { %v1798_v15 = vpop.f32.mrf.mxu1 }
 0xe59   :  { %v1953_v16 = vpop.eup %1952 }
 0xe5a   :  { %631 = vrot.lane.b32.xlu0 %v1953_v16, %s2087_s19 }
 0xe5b   :  { %v1955_v17 = vpop.eup %1954 }
 0xe5c   :  { %v625_v18 = vadd.f32 1.0, %v1955_v17 }
 0xe5e   :  { %1956 = vrcp.f32 %v625_v18 }
 0xe6b   :  { %v1957_v5 = vpop.eup %1956 }
 0xe6c   :  { %v629_v59 = vmul.f32 %v1957_v5, %v559_v63  ;;  %v2348_v63 = vld [vmem:[%s2583_s5] sm:$0xff]  }
 0xecc   :  { %v632_v20 = vpop.permute.xlu0 %631 }
 0xecd   :  { %v634_v21 = vmul.f32 %v1957_v5, %v632_v20 }
 0xecf   :  { %636 = vrot.lane.b32.xlu1 %v634_v21, %s2087_s19 }
 0xf41   :  { %v637_v22 = vpop.permute.xlu1 %636 }
 0xf42   :  { %v639_v23 = vadd.f32 %v637_v22, %v629_v59 }
 0xf44   :  { %1958 = vtanh.f32 %v639_v23 }
 0xf51   :  { %v1959_v24 = vpop.eup %1958 }
 0xf52   :  { %642 = vrot.lane.b32.xlu0 %v1959_v24, %s2087_s19 }
 0xfc4   :  { %v643_v25 = vpop.permute.xlu0 %642 }
 0xfc5   :  { %v2298_v26 = vmul.f32 %v1957_v5, %v643_v25 }
 0xfc7   :  { %v654_v27 = vpack.c.bf16 %v2298_v26, %v2298_v26 }
 0xfc9   :  { %656 = vrot.lane.b32.xlu1 %v654_v27, %s2088_s3 }
0x103b   :  { %v657_v29 = vpop.permute.xlu1 %656 }
0x103c   :  { %1804 = vmatmul.mubr.msk.bf16.vlgmr.msra.gmra.mxu0 %vm178_vm2, %v657_v29 }
0x103d   :  { %1816 = vmatpush3.bf16.msra.mxu0 %v1908_v48 }
0x10fc   :  { %v695_v32 = vpop.f32.mrf.mxu0 }
0x10fd   :  { %v701_v33 = vadd.f32 %v695_v32, %v147_v30 }
0x10fe   :  { %v1805_v34 = vpop.f32.mrf.mxu0 }
0x10ff   :  { %1960 = vtanh.f32 %v701_v33  ;;  %v1655_v37 = vmul.f32 -1.442695, %v701_v33 }
0x1100   :  { %v698_v35 = vpop.f32.mrf.mxu0 }
0x1101   :  { %1962 = vpow2.f32 %v1655_v37 }
0x1102   :  { %v1806_v36 = vpop.f32.mrf.mxu0 }
0x110c   :  { %v1961_v31 = vpop.eup %1960 }
0x110d   :  { %711 = vrot.lane.b32.xlu0 %v1961_v31, %s2087_s19 }
0x110e   :  { %v1963_v38 = vpop.eup %1962 }
0x110f   :  { %v705_v39 = vadd.f32 1.0, %v1963_v38 }
0x1111   :  { %1964 = vrcp.f32 %v705_v39 }
0x111e   :  { %v1965_v40 = vpop.eup %1964 }
0x111f   :  { %v709_v56 = vmul.f32 %v1965_v40, %v639_v23 }
0x117f   :  { %v712_v42 = vpop.permute.xlu0 %711 }
0x1180   :  { %v714_v43 = vmul.f32 %v1965_v40, %v712_v42 }
0x1182   :  { %716 = vrot.lane.b32.xlu1 %v714_v43, %s2087_s19 }
0x1186   :  { %248 = vrot.lane.b32.xlu1 %v2195_v28, %s2088_s3  ;;  %v1909_v28 = vld [vmem:[%s2582_s4] sm:$0xff]  }
0x1187   :  { %1817 = vmatprep.subr.bf16.mxu0 %v1909_v28 }
0x1188   :  { %1818 = vmatpush3.bf16.msra.mxu0 %v1909_v28 }
0x1189   :  { %1843 = vmatprep.subr.bf16.mxu0 %v2084_v1 }
0x118a   :  { %407 = vrot.lane.b32.xlu1 %v2248_v19, %s2088_s3 }
0x11f4   :  { %v717_v44 = vpop.permute.xlu1 %716 }
0x11f5   :  { %v2312_v45 = vadd.f32 %v717_v44, %v709_v56 }
0x11f7   :  { %1966 = vtanh.f32 %v2312_v45 }
0x11f8   :  { %v249_v46 = vpop.permute.xlu1 %248 }
0x11f9   :  { %251 = vst.msk [vmem:[#allocation3] sm:$0xff] %vm178_vm2, %v249_v46 }
0x11fc   :  { %v408_v47 = vpop.permute.xlu1 %407 }
0x11fd   :  { %411 = vst.msk [vmem:[#allocation3 + $0x10] sm:$0xff] %vm178_vm2, %v408_v47 }
0x1200   :  { %v818_v55 = vld [vmem:[#allocation3] sm:$0xff] }
0x1204   :  { %v1967_v19 = vpop.eup %1966 }
0x1205   :  { %722 = vrot.lane.b32.xlu0 %v1967_v19, %s2087_s19 }
0x1209   :  { %327 = vrot.lane.b32.xlu0 %v2223_v53, %s2088_s3 }
0x120d   :  { %487 = vrot.lane.b32.xlu0 %v2265_v41, %s2088_s3  ;;  %v820_v41 = vld [vmem:[#allocation3 + $0x10] sm:$0xff] }
0x1277   :  { %v723_v49 = vpop.permute.xlu0 %722 }
0x1278   :  { %v2329_v50 = vmul.f32 %v1965_v40, %v723_v49 }
0x127a   :  { %v734_v51 = vpack.c.bf16 %v2329_v50, %v2329_v50 }
0x127b   :  { %v328_v52 = vpop.permute.xlu0 %327 }
0x127c   :  { %331 = vst.msk [vmem:[#allocation3 + $0x8] sm:$0xff] %vm178_vm2, %v328_v52  ;;  %736 = vrot.lane.b32.xlu1 %v734_v51, %s2088_s3 }
0x127f   :  { %v488_v54 = vpop.permute.xlu0 %487 }
0x1280   :  { %491 = vst.msk [vmem:[#allocation3 + $0x18] sm:$0xff] %vm178_vm2, %v488_v54 }
0x1283   :  { %v819_v60 = vld [vmem:[#allocation3 + $0x8] sm:$0xff] }
0x1284   :  { %v826_v53 = vpack.c.bf16 %v819_v60, %v818_v55 }
0x1286   :  { %1819 = vmatprep.mubr.msk.bf16.mxu0 %vm178_vm2, %v826_v53 }
0x1287   :  { %v821_v61 = vld [vmem:[#allocation3 + $0x18] sm:$0xff] }
0x1288   :  { %v827_v57 = vpack.c.bf16 %v821_v61, %v820_v41 }
0x128a   :  { %1820 = vmatmul.mubr.msk.bf16.vlgmr.msra.gmra.mxu0 %vm178_vm2, %v827_v57 }
0x128b   :  { %1844 = vmatpush3.bf16.msra.mxu0 %v2340_v62 }
0x128c   :  { %1845 = vmatprep.subr.bf16.mxu0 %v2084_v1 }
0x128f   :  { %1846 = vmatpush3.bf16.msra.mxu0 %v2348_v63 }
0x1290   :  { %1859 = vmatprep.subr.bf16.mxu0 %v2084_v1 }
0x12ee   :  { %v737_v0 = vpop.permute.xlu1 %736 }
0x12ef   :  { %1812 = vmatmul.mubr.msk.bf16.vlgmr.msra.gmra.mxu1 %vm178_vm2, %v737_v0 }
0x12f0   :  { %1828 = vmatpush3.bf16.msra.mxu1 %v2340_v62  ;;  %1831 = vmatprep.mubr.msk.bf16.mxu1 %vm2085_vm1, %v2084_v1 }
0x12f1   :  { %1829 = vmatprep.subr.bf16.mxu1 %v2084_v1 }
0x12f4   :  { %1830 = vmatpush3.bf16.msra.mxu1 %v2348_v63 }
0x12f5   :  { %1835 = vmatprep.subr.bf16.mxu1 %v2084_v1 }
0x12f7   :  { %1832 = vmatmul.mubr.bf16.vlgmr.msra.gmra.mxu1 %v2086_v6 }
0x12f8   :  { %1836 = vmatpush3.bf16.msra.mxu1 %v2340_v62  ;;  %1839 = vmatprep.mubr.msk.bf16.mxu1 %vm2085_vm1, %v2084_v1 }
0x12f9   :  { %1837 = vmatprep.subr.bf16.mxu1 %v2084_v1 }
0x12fc   :  { %1838 = vmatpush3.bf16.msra.mxu1 %v2348_v63 }
0x12fd   :  { %1851 = vmatprep.subr.bf16.mxu1 %v2084_v1 }
0x134a   :  { %v2368_v9 = vpop.f32.mrf.mxu0 }
0x134c   :  { %v899_v6 = vpop.f32.mrf.mxu0 }
0x134d   :  { %v900_v15 = vadd.f32 %v2373_v14, %v899_v6 }
0x134e   :  { %v2404_v48 = vpop.f32.mrf.mxu0 }
0x1350   :  { %v902_v28 = vpop.f32.mrf.mxu0 }
0x1351   :  { %v903_v19 = vadd.f32 %v2373_v14, %v902_v28 }
0x13af   :  { %v775_v10 = vpop.f32.mrf.mxu1 }
0x13b0   :  { %v781_v11 = vadd.f32 %v775_v10, %v150_v3 }
0x13b1   :  { %v1813_v12 = vpop.f32.mrf.mxu1 }
0x13b2   :  { %v1657_v32 = vmul.f32 -1.442695, %v781_v11 }
0x13b3   :  { %v778_v13 = vpop.f32.mrf.mxu1 }
0x13b5   :  { %v1814_v7 = vpop.f32.mrf.mxu1 }
0x13b7   :  { %v989_v16 = vpop.f32.mrf.mxu1 }
0x13b8   :  { %v995_v2 = vadd.f32 %v989_v16, %v900_v15 }
0x13b9   :  { %v1833_v17 = vpop.f32.mrf.mxu1 }
0x13ba   :  { %1968 = vtanh.f32 %v995_v2  ;;  %v1667_v5 = vmul.f32 -1.442695, %v995_v2 }
0x13bb   :  { %v992_v8 = vpop.f32.mrf.mxu1 }
0x13bc   :  { %1970 = vpow2.f32 %v1667_v5 }
0x13bd   :  { %v1834_v58 = vpop.f32.mrf.mxu1 }
0x13c7   :  { %v1969_v18 = vpop.eup %1968 }
0x13c8   :  { %1005 = vrot.lane.b32.xlu0 %v1969_v18, %s2087_s19 }
0x13c9   :  { %v1971_v20 = vpop.eup %1970 }
0x13ca   :  { %v999_v21 = vadd.f32 1.0, %v1971_v20 }
0x13cc   :  { %1972 = vrcp.f32 %v999_v21 }
0x13d9   :  { %v1973_v59 = vpop.eup %1972 }
0x13da   :  { %v1003_v24 = vmul.f32 0.0, %v1973_v59 }
0x143a   :  { %v1006_v22 = vpop.permute.xlu0 %1005 }
0x143b   :  { %v1008_v23 = vmul.f32 %v1973_v59, %v1006_v22 }
0x143d   :  { %1010 = vrot.lane.b32.xlu1 %v1008_v23, %s2087_s19  ;;  %v908_v23 = vadd.f32 %v2368_v9, %v2373_v14 }
0x14af   :  { %v1011_v25 = vpop.permute.xlu1 %1010 }
0x14b0   :  { %v1013_v27 = vadd.f32 %v1011_v25, %v1003_v24 }
0x14b2   :  { %1974 = vtanh.f32 %v1013_v27 }
0x14b3   :  { %1976 = vtanh.f32 %v781_v11 }
0x14b4   :  { %1978 = vpow2.f32 %v1657_v32 }
0x14bf   :  { %v1975_v29 = vpop.eup %1974 }
0x14c0   :  { %1016 = vrot.lane.b32.xlu0 %v1975_v29, %s2087_s19  ;;  %v1977_v30 = vpop.eup %1976 }
0x14c1   :  { %v1979_v33 = vpop.eup %1978 }
0x14c2   :  { %v785_v34 = vadd.f32 1.0, %v1979_v33 }
0x14c4   :  { %791 = vrot.lane.b32.xlu0 %v1977_v30, %s2087_s19  ;;  %1980 = vrcp.f32 %v785_v34 }
0x14d1   :  { %v1981_v37 = vpop.eup %1980 }
0x14d2   :  { %v789_v42 = vmul.f32 %v1981_v37, %v2312_v45 }
0x1532   :  { %v1017_v35 = vpop.permute.xlu0 %1016 }
0x1533   :  { %v2380_v36 = vmul.f32 %v1973_v59, %v1017_v35 }
0x1535   :  { %v1026_v31 = vpack.c.bf16 %v2380_v36, %v2380_v36 }
0x1536   :  { %v792_v38 = vpop.permute.xlu0 %791 }
0x1537   :  { %v794_v39 = vmul.f32 %v1981_v37, %v792_v38  ;;  %1028 = vrot.lane.b32.xlu1 %v1026_v31, %s2088_s3 }
0x1539   :  { %796 = vrot.lane.b32.xlu0 %v794_v39, %s2087_s19 }
0x15a9   :  { %v1029_v40 = vpop.permute.xlu1 %1028 }
0x15aa   :  { %1840 = vmatmul.mubr.msk.bf16.vlgmr.msra.gmra.mxu1 %vm178_vm2, %v1029_v40 }
0x15ab   :  { %v797_v43 = vpop.permute.xlu0 %796  ;;  %1852 = vmatpush3.bf16.msra.mxu1 %v2340_v62  ;;  %1855 = vmatprep.mubr.msk.bf16.mxu1 %vm2085_vm1, %v2084_v1 }
0x15ac   :  { %v2391_v56 = vadd.f32 %v797_v43, %v789_v42  ;;  %1853 = vmatprep.subr.bf16.mxu1 %v2084_v1 }
0x15ae   :  { %1982 = vtanh.f32 %v2391_v56 }
0x15af   :  { %1854 = vmatpush3.bf16.msra.mxu1 %v2348_v63 }
0x15b0   :  { %1867 = vmatprep.subr.bf16.mxu1 %v2084_v1 }
0x15bb   :  { %v1983_v44 = vpop.eup %1982 }
0x15bc   :  { %802 = vrot.lane.b32.xlu0 %v1983_v44, %s2087_s19 }
0x15c0   :  { %567 = vrot.lane.b32.xlu0 %v2281_v4, %s2088_s3 }
0x15c4   :  { %727 = vrot.lane.b32.xlu0 %v2329_v50, %s2088_s3 }
0x162e   :  { %v803_v45 = vpop.permute.xlu0 %802 }
0x162f   :  { %v805_v12 = vmul.f32 %v1981_v37, %v803_v45 }
0x1632   :  { %v568_v46 = vpop.permute.xlu0 %567 }
0x1633   :  { %571 = vst.msk [vmem:[#allocation3 + $0x20] sm:$0xff] %vm178_vm2, %v568_v46 }
0x1636   :  { %v728_v47 = vpop.permute.xlu0 %727 }
0x1637   :  { %731 = vst.msk [vmem:[#allocation3 + $0x30] sm:$0xff] %vm178_vm2, %v728_v47  ;;  %v911_v47 = vadd.f32 %v2404_v48, %v2373_v14 }
0x163e   :  { %v824_v8 = vld [vmem:[#allocation3 + $0x30] sm:$0xff] }
0x166a   :  { %v1067_v49 = vpop.f32.mrf.mxu1 }
0x166b   :  { %v1073_v51 = vadd.f32 %v1067_v49, %v903_v19 }
0x166c   :  { %v1841_v52 = vpop.f32.mrf.mxu1 }
0x166d   :  { %1984 = vtanh.f32 %v1073_v51  ;;  %v1669_v50 = vmul.f32 -1.442695, %v1073_v51 }
0x166e   :  { %v1070_v4 = vpop.f32.mrf.mxu1 }
0x166f   :  { %1986 = vpow2.f32 %v1669_v50 }
0x1670   :  { %v1842_v54 = vpop.f32.mrf.mxu1 }
0x167a   :  { %v1985_v55 = vpop.eup %1984 }
0x167b   :  { %1083 = vrot.lane.b32.xlu1 %v1985_v55, %s2087_s19 }
0x167c   :  { %v1987_v60 = vpop.eup %1986 }
0x167d   :  { %v1077_v53 = vadd.f32 1.0, %v1987_v60 }
0x167f   :  { %1988 = vrcp.f32 %v1077_v53 }
0x168c   :  { %v1989_v41 = vpop.eup %1988 }
0x168d   :  { %v1081_v0 = vmul.f32 %v1989_v41, %v1013_v27 }
0x16ed   :  { %v1084_v61 = vpop.permute.xlu1 %1083 }
0x16ee   :  { %v1086_v57 = vmul.f32 %v1989_v41, %v1084_v61 }
0x16f0   :  { %1088 = vrot.lane.b32.xlu1 %v1086_v57, %s2087_s19 }
0x1762   :  { %v1089_v3 = vpop.permute.xlu1 %1088 }
0x1763   :  { %v1091_v10 = vadd.f32 %v1089_v3, %v1081_v0 }
0x1765   :  { %1990 = vtanh.f32 %v1091_v10 }
0x1772   :  { %v1991_v11 = vpop.eup %1990 }
0x1773   :  { %1094 = vrot.lane.b32.xlu1 %v1991_v11, %s2087_s19 }
0x1777   :  { %647 = vrot.lane.b32.xlu1 %v2298_v26, %s2088_s3  ;;  %v822_v26 = vld [vmem:[#allocation3 + $0x20] sm:$0xff] }
0x177b   :  { %807 = vrot.lane.b32.xlu1 %v805_v12, %s2088_s3 }
0x17e5   :  { %v1095_v6 = vpop.permute.xlu1 %1094 }
0x17e6   :  { %v2413_v13 = vmul.f32 %v1989_v41, %v1095_v6 }
0x17e8   :  { %v1104_v7 = vpack.c.bf16 %v2413_v13, %v2413_v13 }
0x17e9   :  { %v648_v15 = vpop.permute.xlu1 %647 }
0x17ea   :  { %651 = vst.msk [vmem:[#allocation3 + $0x28] sm:$0xff] %vm178_vm2, %v648_v15  ;;  %1106 = vrot.lane.b32.xlu0 %v1104_v7, %s2088_s3 }
0x17ed   :  { %v808_v16 = vpop.permute.xlu1 %807 }
0x17ee   :  { %811 = vst.msk [vmem:[#allocation3 + $0x38] sm:$0xff] %vm178_vm2, %v808_v16  ;;  %812 = vst.msk [vmem:[#allocation4] sm:$0xff] %vm178_vm2, %v808_v16 }
0x17f1   :  { %v823_v2 = vld [vmem:[#allocation3 + $0x28] sm:$0xff] }
0x17f2   :  { %v828_v17 = vpack.c.bf16 %v823_v2, %v822_v26 }
0x17f4   :  { %1823 = vmatprep.mubr.msk.bf16.mxu0 %vm178_vm2, %v828_v17 }
0x17f5   :  { %v825_v58 = vld [vmem:[#allocation3 + $0x38] sm:$0xff] }
0x17f6   :  { %v829_v18 = vpack.c.bf16 %v825_v58, %v824_v8 }
0x17f8   :  { %1824 = vmatmul.mubr.msk.bf16.gmra.mxu0 %vm178_vm2, %v829_v18 }
0x17f9   :  { %1847 = vmatprep.mubr.msk.bf16.mxu0 %vm2085_vm1, %v2084_v1 }
0x185c   :  { %v1107_v5 = vpop.permute.xlu0 %1106 }
0x185d   :  { %1848 = vmatmul.mubr.msk.bf16.vlgmr.msra.gmra.mxu0 %vm178_vm2, %v1107_v5 }
0x185e   :  { %1860 = vmatpush3.bf16.msra.mxu0 %v2340_v62  ;;  %1863 = vmatprep.mubr.msk.bf16.mxu0 %vm2085_vm1, %v2084_v1 }
0x185f   :  { %1861 = vmatprep.subr.bf16.mxu0 %v2084_v1 }
0x1862   :  { %1862 = vmatpush3.bf16.msra.mxu0 %v2348_v63 }
0x1863   :  { %1875 = vmatprep.subr.bf16.mxu0 %v2084_v1 }
0x18b8   :  { %v2432_v20 = vpop.f32.mrf.mxu0 }
0x18ba   :  { %v2434_v21 = vpop.f32.mrf.mxu0 }
0x18bb   :  { %v916_v6 = vadd.f32 %v2373_v14, %v2434_v21 }
0x18bc   :  { %v2436_v59 = vpop.f32.mrf.mxu0 }
0x18be   :  { %v2438_v22 = vpop.f32.mrf.mxu0 }
0x191d   :  { %v1145_v24 = vpop.f32.mrf.mxu0 }
0x191e   :  { %v1151_v25 = vadd.f32 %v1145_v24, %v908_v23 }
0x191f   :  { %v1849_v27 = vpop.f32.mrf.mxu0 }
0x1920   :  { %1992 = vtanh.f32 %v1151_v25  ;;  %v1671_v33 = vmul.f32 -1.442695, %v1151_v25 }
0x1921   :  { %v1148_v29 = vpop.f32.mrf.mxu0 }
0x1922   :  { %1994 = vpow2.f32 %v1671_v33 }
0x1923   :  { %v1850_v30 = vpop.f32.mrf.mxu0 }
0x192d   :  { %v1993_v32 = vpop.eup %1992 }
0x192e   :  { %1161 = vrot.lane.b32.xlu1 %v1993_v32, %s2087_s19 }
0x192f   :  { %v1995_v34 = vpop.eup %1994 }
0x1930   :  { %v1155_v35 = vadd.f32 1.0, %v1995_v34 }
0x1932   :  { %1996 = vrcp.f32 %v1155_v35  ;;  %v919_v35 = vadd.f32 %v2373_v14, %v2438_v22 }
0x193f   :  { %v1997_v31 = vpop.eup %1996 }
0x1940   :  { %v1159_v9 = vmul.f32 %v1997_v31, %v1091_v10 }
0x19a0   :  { %v1162_v37 = vpop.permute.xlu1 %1161 }
0x19a1   :  { %v1164_v38 = vmul.f32 %v1997_v31, %v1162_v37 }
0x19a3   :  { %1166 = vrot.lane.b32.xlu0 %v1164_v38, %s2087_s19 }
0x1a15   :  { %v1167_v39 = vpop.permute.xlu0 %1166 }
0x1a16   :  { %v1169_v40 = vadd.f32 %v1167_v39, %v1159_v9 }
0x1a18   :  { %1998 = vtanh.f32 %v1169_v40 }
0x1a25   :  { %v1999_v42 = vpop.eup %1998 }
0x1a26   :  { %1172 = vrot.lane.b32.xlu1 %v1999_v42, %s2087_s19 }
0x1a98   :  { %v1173_v43 = vpop.permute.xlu1 %1172 }
0x1a99   :  { %v2445_v44 = vmul.f32 %v1997_v31, %v1173_v43 }
0x1a9b   :  { %v1182_v45 = vpack.c.bf16 %v2445_v44, %v2445_v44 }
0x1a9d   :  { %1184 = vrot.lane.b32.xlu0 %v1182_v45, %s2088_s3 }
0x1b0f   :  { %v1185_v46 = vpop.permute.xlu0 %1184 }
0x1b10   :  { %1856 = vmatmul.mubr.msk.bf16.vlgmr.msra.gmra.mxu1 %vm178_vm2, %v1185_v46 }
0x1b11   :  { %1868 = vmatpush3.bf16.msra.mxu1 %v2340_v62  ;;  %1871 = vmatprep.mubr.msk.bf16.mxu1 %vm2085_vm1, %v2084_v1 }
0x1b12   :  { %1869 = vmatprep.subr.bf16.mxu1 %v2084_v1 }
0x1b15   :  { %1870 = vmatpush3.bf16.msra.mxu1 %v2348_v63 }
0x1b16   :  { %1883 = vmatprep.subr.bf16.mxu1 %v2084_v1 }
0x1bd0   :  { %v1223_v28 = vpop.f32.mrf.mxu1 }
0x1bd1   :  { %v1229_v19 = vadd.f32 %v1223_v28, %v911_v47 }
0x1bd2   :  { %v1857_v49 = vpop.f32.mrf.mxu1 }
0x1bd3   :  { %2000 = vtanh.f32 %v1229_v19  ;;  %v1673_v54 = vmul.f32 -1.442695, %v1229_v19 }
0x1bd4   :  { %v1226_v51 = vpop.f32.mrf.mxu1 }
0x1bd5   :  { %2002 = vpow2.f32 %v1673_v54 }
0x1bd6   :  { %v1858_v52 = vpop.f32.mrf.mxu1 }
0x1be0   :  { %v2001_v4 = vpop.eup %2000 }
0x1be1   :  { %1239 = vrot.lane.b32.xlu1 %v2001_v4, %s2087_s19  ;;  %v924_v4 = vadd.f32 %v2432_v20, %v2373_v14 }
0x1be2   :  { %v2003_v55 = vpop.eup %2002 }
0x1be3   :  { %v1233_v50 = vadd.f32 1.0, %v2003_v55 }
0x1be5   :  { %2004 = vrcp.f32 %v1233_v50 }
0x1bf2   :  { %v2005_v60 = vpop.eup %2004 }
0x1bf3   :  { %v1237_v48 = vmul.f32 %v2005_v60, %v1169_v40 }
0x1c53   :  { %v1240_v53 = vpop.permute.xlu1 %1239 }
0x1c54   :  { %v1242_v41 = vmul.f32 %v2005_v60, %v1240_v53 }
0x1c56   :  { %1244 = vrot.lane.b32.xlu0 %v1242_v41, %s2087_s19 }
0x1cc8   :  { %v1245_v61 = vpop.permute.xlu0 %1244 }
0x1cc9   :  { %v1247_v57 = vadd.f32 %v1245_v61, %v1237_v48 }
0x1ccb   :  { %2006 = vtanh.f32 %v1247_v57 }
0x1cd8   :  { %v2007_v0 = vpop.eup %2006 }
0x1cd9   :  { %1250 = vrot.lane.b32.xlu1 %v2007_v0, %s2087_s19 }
0x1d4b   :  { %v1251_v3 = vpop.permute.xlu1 %1250 }
0x1d4c   :  { %v2462_v10 = vmul.f32 %v2005_v60, %v1251_v3 }
0x1d4e   :  { %v1260_v11 = vpack.c.bf16 %v2462_v10, %v2462_v10 }
0x1d50   :  { %1262 = vrot.lane.b32.xlu0 %v1260_v11, %s2088_s3 }
0x1dc2   :  { %v1263_v12 = vpop.permute.xlu0 %1262 }
0x1dc3   :  { %1864 = vmatmul.mubr.msk.bf16.vlgmr.msra.gmra.mxu0 %vm178_vm2, %v1263_v12 }
0x1dc4   :  { %1876 = vmatpush3.bf16.msra.mxu0 %v2340_v62  ;;  %1879 = vmatprep.mubr.msk.bf16.mxu0 %vm2085_vm1, %v2084_v1 }
0x1dc5   :  { %1877 = vmatprep.subr.bf16.mxu0 %v2084_v1 }
0x1dc8   :  { %1878 = vmatpush3.bf16.msra.mxu0 %v2348_v63 }
0x1e83   :  { %v1301_v7 = vpop.f32.mrf.mxu0 }
0x1e84   :  { %v1307_v15 = vadd.f32 %v1301_v7, %v916_v6 }
0x1e85   :  { %v1865_v16 = vpop.f32.mrf.mxu0 }
0x1e86   :  { %2008 = vtanh.f32 %v1307_v15  ;;  %v1675_v8 = vmul.f32 -1.442695, %v1307_v15 }
0x1e87   :  { %v1304_v26 = vpop.f32.mrf.mxu0 }
0x1e88   :  { %2010 = vpow2.f32 %v1675_v8 }
0x1e89   :  { %v1866_v2 = vpop.f32.mrf.mxu0 }
0x1e93   :  { %v2009_v17 = vpop.eup %2008 }
0x1e94   :  { %1317 = vrot.lane.b32.xlu1 %v2009_v17, %s2087_s19  ;;  %v927_v17 = vadd.f32 %v2436_v59, %v2373_v14 }
0x1e95   :  { %v2011_v58 = vpop.eup %2010 }
0x1e96   :  { %v1311_v18 = vadd.f32 1.0, %v2011_v58 }
0x1e98   :  { %2012 = vrcp.f32 %v1311_v18 }
0x1ea5   :  { %v2013_v5 = vpop.eup %2012 }
0x1ea6   :  { %v1315_v21 = vmul.f32 %v2013_v5, %v1247_v57 }
0x1f06   :  { %v1318_v23 = vpop.permute.xlu1 %1317 }
0x1f07   :  { %v1320_v24 = vmul.f32 %v2013_v5, %v1318_v23 }
0x1f09   :  { %1322 = vrot.lane.b32.xlu0 %v1320_v24, %s2087_s19 }
0x1f7b   :  { %v1323_v25 = vpop.permute.xlu0 %1322 }
0x1f7c   :  { %v1325_v27 = vadd.f32 %v1323_v25, %v1315_v21 }
0x1f7e   :  { %2014 = vtanh.f32 %v1325_v27 }
0x1f8b   :  { %v2015_v29 = vpop.eup %2014 }
0x1f8c   :  { %1328 = vrot.lane.b32.xlu1 %v2015_v29, %s2087_s19 }
0x1ffe   :  { %v1329_v30 = vpop.permute.xlu1 %1328 }
0x1fff   :  { %v2478_v32 = vmul.f32 %v2013_v5, %v1329_v30 }
0x2001   :  { %v1338_v33 = vpack.c.bf16 %v2478_v32, %v2478_v32 }
0x2003   :  { %1340 = vrot.lane.b32.xlu0 %v1338_v33, %s2088_s3 }
0x2075   :  { %v1341_v34 = vpop.permute.xlu0 %1340 }
0x2076   :  { %1872 = vmatmul.mubr.msk.bf16.vlgmr.msra.gmra.mxu1 %vm178_vm2, %v1341_v34 }
0x2077   :  { %1884 = vmatpush3.bf16.msra.mxu1 %v2340_v62  ;;  %1887 = vmatprep.mubr.msk.bf16.mxu1 %vm2085_vm1, %v2084_v1 }
0x2078   :  { %1885 = vmatprep.subr.bf16.mxu1 %v2084_v1 }
0x207b   :  { %1886 = vmatpush3.bf16.msra.mxu1 %v2348_v63 }
0x2136   :  { %v1379_v31 = vpop.f32.mrf.mxu1 }
0x2137   :  { %v1385_v37 = vadd.f32 %v1379_v31, %v919_v35 }
0x2138   :  { %v1873_v38 = vpop.f32.mrf.mxu1 }
0x2139   :  { %2016 = vtanh.f32 %v1385_v37  ;;  %v1677_v62 = vmul.f32 -1.442695, %v1385_v37 }
0x213a   :  { %v1382_v9 = vpop.f32.mrf.mxu1 }
0x213b   :  { %2018 = vpow2.f32 %v1677_v62 }
0x213c   :  { %v1874_v39 = vpop.f32.mrf.mxu1 }
0x2146   :  { %v2017_v40 = vpop.eup %2016 }
0x2147   :  { %1395 = vrot.lane.b32.xlu1 %v2017_v40, %s2087_s19 }
0x2148   :  { %v2019_v42 = vpop.eup %2018 }
0x2149   :  { %v1389_v43 = vadd.f32 1.0, %v2019_v42 }
0x214b   :  { %2020 = vrcp.f32 %v1389_v43 }
0x2158   :  { %v2021_v1 = vpop.eup %2020 }
0x2159   :  { %v1393_v22 = vmul.f32 %v2021_v1, %v1325_v27 }
0x21b9   :  { %v1396_v45 = vpop.permute.xlu1 %1395 }
0x21ba   :  { %v1398_v63 = vmul.f32 %v2021_v1, %v1396_v45 }
0x21bc   :  { %1400 = vrot.lane.b32.xlu0 %v1398_v63, %s2087_s19 }
0x222e   :  { %v1401_v46 = vpop.permute.xlu0 %1400 }
0x222f   :  { %v1403_v47 = vadd.f32 %v1401_v46, %v1393_v22 }
0x2231   :  { %2022 = vtanh.f32 %v1403_v47 }
0x223e   :  { %v2023_v28 = vpop.eup %2022 }
0x223f   :  { %1406 = vrot.lane.b32.xlu1 %v2023_v28, %s2087_s19 }
0x22b1   :  { %v1407_v19 = vpop.permute.xlu1 %1406 }
0x22b2   :  { %v2494_v49 = vmul.f32 %v2021_v1, %v1407_v19 }
0x22b4   :  { %v1416_v51 = vpack.c.bf16 %v2494_v49, %v2494_v49 }
0x22b6   :  { %1418 = vrot.lane.b32.xlu0 %v1416_v51, %s2088_s3 }
0x2328   :  { %v1419_v52 = vpop.permute.xlu0 %1418 }
0x2329   :  { %1880 = vmatmul.mubr.msk.bf16.vlgmr.msra.gmra.mxu0 %vm178_vm2, %v1419_v52 }
0x23e9   :  { %v1457_v54 = vpop.f32.mrf.mxu0 }
0x23ea   :  { %v1463_v55 = vadd.f32 %v1457_v54, %v924_v4 }
0x23eb   :  { %v1881_v50 = vpop.f32.mrf.mxu0 }
0x23ec   :  { %2024 = vtanh.f32 %v1463_v55  ;;  %v1679_v48 = vmul.f32 -1.442695, %v1463_v55 }
0x23ed   :  { %v1460_v60 = vpop.f32.mrf.mxu0 }
0x23ee   :  { %2026 = vpow2.f32 %v1679_v48 }
0x23ef   :  { %v1882_v53 = vpop.f32.mrf.mxu0 }
0x23f9   :  { %v2025_v41 = vpop.eup %2024 }
0x23fa   :  { %1473 = vrot.lane.b32.xlu1 %v2025_v41, %s2087_s19 }
0x23fb   :  { %v2027_v61 = vpop.eup %2026 }
0x23fc   :  { %v1467_v57 = vadd.f32 1.0, %v2027_v61 }
0x23fe   :  { %2028 = vrcp.f32 %v1467_v57 }
0x240b   :  { %v2029_v0 = vpop.eup %2028 }
0x240c   :  { %v1471_v20 = vmul.f32 %v2029_v0, %v1403_v47 }
0x246c   :  { %v1474_v3 = vpop.permute.xlu1 %1473 }
0x246d   :  { %v1476_v11 = vmul.f32 %v2029_v0, %v1474_v3 }
0x246f   :  { %1478 = vrot.lane.b32.xlu0 %v1476_v11, %s2087_s19 }
0x24e1   :  { %v1479_v12 = vpop.permute.xlu0 %1478 }
0x24e2   :  { %v1481_v6 = vadd.f32 %v1479_v12, %v1471_v20 }
0x24e4   :  { %2030 = vtanh.f32 %v1481_v6 }
0x24f1   :  { %v2031_v7 = vpop.eup %2030 }
0x24f2   :  { %1484 = vrot.lane.b32.xlu1 %v2031_v7, %s2087_s19 }
0x2564   :  { %v1485_v15 = vpop.permute.xlu1 %1484 }
0x2565   :  { %v1487_v16 = vmul.f32 %v2029_v0, %v1485_v15 }
0x2567   :  { %v1494_v26 = vpack.c.bf16 %v1487_v16, %v1487_v16 }
0x2569   :  { %1496 = vrot.lane.b32.xlu0 %v1494_v26, %s2088_s3 }
0x25db   :  { %v1497_v2 = vpop.permute.xlu0 %1496 }
0x25dc   :  { %1888 = vmatmul.mubr.msk.bf16.vlgmr.msra.gmra.mxu1 %vm178_vm2, %v1497_v2 }
0x269c   :  { %v1535_v8 = vpop.f32.mrf.mxu1 }
0x269d   :  { %v1541_v58 = vadd.f32 %v1535_v8, %v927_v17 }
0x269e   :  { %v1889_v18 = vpop.f32.mrf.mxu1 }
0x269f   :  { %2032 = vtanh.f32 %v1541_v58  ;;  %v1681_v21 = vmul.f32 -1.442695, %v1541_v58 }
0x26a0   :  { %v1538_v5 = vpop.f32.mrf.mxu1 }
0x26a1   :  { %2034 = vpow2.f32 %v1681_v21 }
0x26a2   :  { %v1890_v23 = vpop.f32.mrf.mxu1 }
0x26ac   :  { %v2033_v24 = vpop.eup %2032 }
0x26ad   :  { %1551 = vrot.lane.b32.xlu1 %v2033_v24, %s2087_s19 }
0x26ae   :  { %v2035_v25 = vpop.eup %2034 }
0x26af   :  { %v1545_v27 = vadd.f32 1.0, %v2035_v25 }
0x26b1   :  { %2036 = vrcp.f32 %v1545_v27 }
0x26be   :  { %v2037_v29 = vpop.eup %2036 }
0x26bf   :  { %v1549_v14 = vmul.f32 %v2037_v29, %v1481_v6 }
0x271f   :  { %v1552_v30 = vpop.permute.xlu1 %1551 }
0x2720   :  { %v1554_v33 = vmul.f32 %v2037_v29, %v1552_v30 }
0x2722   :  { %1556 = vrot.lane.b32.xlu0 %v1554_v33, %s2087_s19 }
0x2726   :  { %1021 = vrot.lane.b32.xlu0 %v2380_v36, %s2088_s3 }
0x272a   :  { %1177 = vrot.lane.b32.xlu0 %v2445_v44, %s2088_s3 }
0x272e   :  { %1333 = vrot.lane.b32.xlu0 %v2478_v32, %s2088_s3 }
0x2732   :  { %1489 = vrot.lane.b32.xlu0 %v1487_v16, %s2088_s3 }
0x2736   :  { %814 = vrot.lane.b32.xlu0 %v2391_v56, %s2089_s6 }
0x2794   :  { %v1557_v59 = vpop.permute.xlu0 %1556 }
0x2795   :  { %v1559_v34 = vadd.f32 %v1557_v59, %v1549_v14 }
0x2797   :  { %2038 = vtanh.f32 %v1559_v34 }
0x2798   :  { %v1022_v35 = vpop.permute.xlu0 %1021 }
0x2799   :  { %1024 = vst.msk [vmem:[#allocation3] sm:$0xff] %vm178_vm2, %v1022_v35 }
0x279c   :  { %v1178_v36 = vpop.permute.xlu0 %1177 }
0x279d   :  { %1180 = vst.msk [vmem:[#allocation3 + $0x10] sm:$0xff] %vm178_vm2, %v1178_v36 }
0x27a0   :  { %v1579_v44 = vld [vmem:[#allocation3] sm:$0xff]  ;;  %v1334_v31 = vpop.permute.xlu0 %1333 }
0x27a1   :  { %1587 = vst.msk [vmem:[%s2585_s7] sm:$0xff] %vm178_vm2, %v1579_v44  ;;  %1336 = vst.msk [vmem:[#allocation3 + $0x20] sm:$0xff] %vm178_vm2, %v1334_v31 }
0x27a4   :  { %v2039_v56 = vpop.eup %2038  ;;  %v1581_v32 = vld [vmem:[#allocation3 + $0x10] sm:$0xff]  ;;  %v1490_v37 = vpop.permute.xlu0 %1489 }
0x27a5   :  { %1589 = vst.msk [vmem:[%s2585_s7 + $0x10] sm:$0xff] %vm178_vm2, %v1581_v32  ;;  %1492 = vst.msk [vmem:[#allocation3 + $0x30] sm:$0xff] %vm178_vm2, %v1490_v37  ;;  %1562 = vrot.lane.b32.xlu1 %v2039_v56, %s2087_s19 }
0x27a8   :  { %v1583_v38 = vld [vmem:[#allocation3 + $0x20] sm:$0xff]  ;;  %v815_v9 = vpop.permute.xlu0 %814 }
0x27a9   :  { %1591 = vst.msk [vmem:[%s2585_s7 + $0x20] sm:$0xff] %vm178_vm2, %v1583_v38  ;;  %817 = vst.msk [vmem:[#allocation6] sm:$0xff] %vm178_vm2, %v815_v9  ;;  %1099 = vrot.lane.b32.xlu1 %v2413_v13, %s2088_s3 }
0x27ac   :  { %v1585_v39 = vld [vmem:[#allocation3 + $0x30] sm:$0xff] }
0x27ad   :  { %1593 = vst.msk [vmem:[%s2585_s7 + $0x30] sm:$0xff] %vm178_vm2, %v1585_v39  ;;  %1255 = vrot.lane.b32.xlu1 %v2462_v10, %s2088_s3 }
0x27b1   :  { %1411 = vrot.lane.b32.xlu1 %v2494_v49, %s2088_s3 }
0x2817   :  { %v1563_v40 = vpop.permute.xlu1 %1562 }
0x2818   :  { %v1565_v62 = vmul.f32 %v2037_v29, %v1563_v40 }
0x281a   :  { %1567 = vrot.lane.b32.xlu1 %v1565_v62, %s2088_s3 }
0x281b   :  { %v1100_v42 = vpop.permute.xlu1 %1099 }
0x281c   :  { %1102 = vst.msk [vmem:[#allocation3 + $0x8] sm:$0xff] %vm178_vm2, %v1100_v42 }
0x281e   :  { %1574 = vrot.lane.b32.xlu1 %v1559_v34, %s2089_s6 }
0x281f   :  { %v1256_v13 = vpop.permute.xlu1 %1255 }
0x2820   :  { %1258 = vst.msk [vmem:[#allocation3 + $0x18] sm:$0xff] %vm178_vm2, %v1256_v13 }
0x2823   :  { %v1580_v43 = vld [vmem:[#allocation3 + $0x8] sm:$0xff]  ;;  %v1412_v1 = vpop.permute.xlu1 %1411 }
0x2824   :  { %1588 = vst.msk [vmem:[%s2585_s7 + $0x8] sm:$0xff] %vm178_vm2, %v1580_v43  ;;  %1414 = vst.msk [vmem:[#allocation3 + $0x28] sm:$0xff] %vm178_vm2, %v1412_v1 }
0x2827   :  { %v1582_v10 = vld [vmem:[#allocation3 + $0x18] sm:$0xff] }
0x2828   :  { %1590 = vst.msk [vmem:[%s2585_s7 + $0x18] sm:$0xff] %vm178_vm2, %v1582_v10 }
0x282b   :  { %v1584_v45 = vld [vmem:[#allocation3 + $0x28] sm:$0xff] }
0x282c   :  { %1592 = vst.msk [vmem:[%s2585_s7 + $0x28] sm:$0xff] %vm178_vm2, %v1584_v45 }
0x288c   :  { %v1568_v63 = vpop.permute.xlu1 %1567 }
0x288d   :  { %1570 = vst.msk [vmem:[#allocation3 + $0x38] sm:$0xff] %vm178_vm2, %v1568_v63  ;;  %1572 = vst.msk [vmem:[#allocation4 + $0x8] sm:$0xff] %vm178_vm2, %v1568_v63 }
0x288e   :  { %2051 = shalt.err (!%p2048_p4)
}
0x288f   :  { %s2092_s25 = smov 128   ;;  %s2093_s26 = smov 8  }
0x2890   :  { %1608 = dma.vmem_to_hbm [thread:$0]  %s1603_s22, 256, %s2586_s8, [#allocation5], %s2092_s25, %s2092_s25, %s2093_s26   ;;  %v1575_v22 = vpop.permute.xlu1 %1574 }
0x2891   :  { %1578 = vst.msk [vmem:[#allocation6 + $0x8] sm:$0xff] %vm178_vm2, %v1575_v22  ;;  %s2060_s28 = scalar_lea.vmem %s1615_s0, 256  ;;  %p2065_p6 = scmp.lt.s32.totalorder %s1615_s0, %s1615_s0 }
0x2892   :  { %p2061_p5 = scmp.ne.s32.totalorder %s1615_s0, %s2060_s28  ;;  %p2066_p7 = scmp.lt.s32.totalorder %s2060_s28, %s2060_s28 }
0x2894   :  { %p2067_p8 = por %p2066_p7, %p2065_p6 }
0x2896   :  { %p2068_p9 = pnand %p2067_p8, %p2061_p5 }
0x2898   :  { %2071 = shalt.err (!%p2068_p9)
}
0x2899   :  { %1620 = dma.vmem_to_hbm [thread:$0]  %s1615_s0, 256, %s2587_s9, [#allocation7], %s2092_s25, %s2092_s25, %s2093_s26   ;;  %v1586_v46 = vld [vmem:[#allocation3 + $0x38] sm:$0xff] }
0x289a   :  { %1594 = vst.msk [vmem:[%s2585_s7 + $0x38] sm:$0xff] %vm178_vm2, %v1586_v46 }
0x289b   :  { %2080 = dma.done.wait [#allocation5], 256  }
0x289c   :  { %2081 = vsyncadd [#allocation5], 4294967040 }
0x289d   :  { %2082 = dma.done.wait [#allocation7], 256  }
0x289e   :  { %2083 = vsyncadd [#allocation7], 4294967040 }
0x289f   :  { %1629 = vsyncpa [#allocation5], 1 }
0x28a0   :  { %1630 = vsyncpa [#allocation7], 1 }

</bundles_post_ra>
